<compile_context>
chip_gen: v6e
topology: v6e:2x2x1
jax: 0.10.0
libtpu: 0.0.40
codegen_flags: <defaults>
</compile_context>

<pallas_src>
import functools

import jax
import jax.numpy as jnp
from jax.experimental import pallas as pl
from jax.experimental.pallas import tpu as pltpu


def _synth_attn_kernel(x_ref, w1_ref, b1_ref, wv_ref, bv_ref,
                       w2b_ref, bias_ref, wp_ref, bp_ref, o_ref,
                       *, n_head: int, seq_len: int, head_size: int,
                       block_b: int):
    T, hs, bb = seq_len, head_size, block_b
    f32 = jnp.float32
    cdt = x_ref.dtype                           # MXU compute dtype (bf16)
    C = o_ref.shape[-1]

    x = x_ref[...]                              # (bb*T, C) bf16

    # a = relu(x @ w1 + b1), v = x @ wv + bv : full row-block matmuls, f32 acc.
    a = jnp.maximum(
        jnp.dot(x, w1_ref[...], preferred_element_type=f32) + b1_ref[...], 0.0)
    v_c = (jnp.dot(x, wv_ref[...], preferred_element_type=f32)
           + bv_ref[...]).astype(cdt)           # cast once, sliced per head below

    # All heads' synthesizer logits in one lane-dense matmul:
    # (bb*T, C) @ (C, n_head*T) -> (bb*T, n_head*T), f32 accumulate.
    logits = jnp.dot(a.astype(cdt), w2b_ref[...], preferred_element_type=f32)

    bias = bias_ref[...]                        # (T, T): b2 + causal(-1e10)
    bp = bp_ref[...]                            # (1, C)

    for b in range(bb):                         # static & small (bounded <= 8)
        r0 = b * T
        acc = jnp.zeros((T, C), f32)
        for h in range(n_head):                 # static per-head loop
            c0 = h * T
            # Per-head causal softmax (per-head max -> numerically safe).
            lh = logits[r0:r0 + T, c0:c0 + T] + bias        # (T, T) f32
            m = jnp.max(lh, axis=-1, keepdims=True)
            e = jnp.exp(lh - m)                              # masked cols -> 0
            d = jnp.sum(e, axis=-1, keepdims=True)           # (T, 1) thin denom
            p = (e * pl.reciprocal(d, approx=True)).astype(cdt)
            # attention @ v : natural per-head matmul, no head-masked copies.
            vh = v_c[r0:r0 + T, h * hs:(h + 1) * hs]         # (T, hs)
            yh = jnp.dot(p, vh, preferred_element_type=f32)  # (T, hs) f32
            # Output projection accumulated per head: y @ wp == sum_h yh @ wp_h.
            acc = acc + jnp.dot(yh.astype(cdt),
                                wp_ref[h * hs:(h + 1) * hs, :],
                                preferred_element_type=f32)
        o_ref[r0:r0 + T, :] = (acc + bp).astype(o_ref.dtype)


def _vmem_limit_bytes() -> int:
    # Generation-aware VMEM cap with headroom: ~48 MiB on v7x (64 MiB physical),
    # ~96-100 MiB on v5e / v6e (128 MiB physical).
    cap = 64 * 1024 * 1024
    try:
        cap = int(getattr(pltpu.get_tpu_info(), "vmem_capacity_bytes", cap))
    except Exception:
        pass
    return int(max(32 * 1024 * 1024, min(cap * 3 // 4, 100 * 1024 * 1024)))


def _build_call(*, B, T, C, NT, n_head, hs, block_b, out_dtype,
                single_buffer_weights):
    nb = B // block_b
    R = block_b * T
    kernel = functools.partial(_synth_attn_kernel, n_head=n_head, seq_len=T,
                               head_size=hs, block_b=block_b)

    def const_spec(shape):
        # Grid-constant operand: constant index_map; request a single buffer.
        kwargs = {}
        if single_buffer_weights:
            kwargs["pipeline_mode"] = pl.Buffered(1)
        return pl.BlockSpec(shape, lambda i: (0,) * len(shape), **kwargs)

    return pl.pallas_call(
        kernel,
        out_shape=jax.ShapeDtypeStruct((B * T, C), out_dtype),
        grid=(nb,),
        in_specs=[
            pl.BlockSpec((R, C), lambda i: (i, 0)),   # x rows (pipelined)
            const_spec((C, C)),                       # w1   (bf16)
            const_spec((1, C)),                       # b1   (f32)
            const_spec((C, C)),                       # wv   (bf16)
            const_spec((1, C)),                       # bv   (f32)
            const_spec((C, NT)),                      # block-diagonal w2 (bf16)
            const_spec((T, T)),                       # b2 + causal bias  (f32)
            const_spec((C, C)),                       # wp   (bf16)
            const_spec((1, C)),                       # bp   (f32)
        ],
        out_specs=pl.BlockSpec((R, C), lambda i: (i, 0)),
        compiler_params=pltpu.CompilerParams(
            dimension_semantics=("parallel",),
            vmem_limit_bytes=_vmem_limit_bytes()),
    )


def synthesizer_attention(x, params, n_head, *, block_b=None,
                          compute_dtype=jnp.bfloat16):
    """x: (B, T, C) float32.  params: dict of weights (see __main__)."""
    B, T, C = x.shape
    assert C % n_head == 0
    hs = C // n_head
    w1, b1 = params["w1"], params["b1"]            # (C, C), (C,)
    wv, bv = params["wv"], params["bv"]            # (C, C), (C,)
    w2, b2 = params["w2"], params["b2"]            # (hs, bs-1), (bs-1,)
    wp, bp = params["wp"], params["bp"]            # (C, C), (C,)
    assert T <= w2.shape[1], "sequence length T must be <= block_size - 1"

    # Batch blocking: prefer >= 2 grid steps (v7x has 2 TensorCores to shard
    # the "parallel" axis over) while keeping the per-batch unrolled loop small.
    if block_b is None:
        divisors = [d for d in range(1, B + 1) if B % d == 0]
        usable = [d for d in divisors if (d * T) % 8 == 0] or [B]
        multi = [d for d in usable if B // d >= 2 and d <= 8]
        block_b = max(multi) if multi else min(usable)
    if (B % block_b) or ((B // block_b) > 1 and (block_b * T) % 8):
        block_b = B                                # single fat step fallback
    NT = n_head * T

    f32 = jnp.float32
    cdt = compute_dtype
    # Block-diagonal per-head synthesizer weights: (C, n_head*T).
    # (For very long T, per-head (hs,T) matmuls would avoid the zero blocks.)
    w2blk = jnp.kron(jnp.eye(n_head, dtype=f32), w2[:, :T].astype(f32))
    # Additive bias = b2 + causal mask (-1e10); identical per head -> (T, T).
    causal = jnp.tril(jnp.ones((T, T), dtype=bool))
    bias = (b2[:T][None, :].astype(f32)
            + jnp.where(causal, 0.0, -10000000000.0).astype(f32))

    x2 = x.reshape(B * T, C).astype(cdt)           # free row-major reshape
    args = (x2,
            w1.astype(cdt), b1.reshape(1, C).astype(f32),
            wv.astype(cdt), bv.reshape(1, C).astype(f32),
            w2blk.astype(cdt), bias,
            wp.astype(cdt), bp.reshape(1, C).astype(f32))

    build = functools.partial(_build_call, B=B, T=T, C=C, NT=NT, n_head=n_head,
                              hs=hs, block_b=block_b, out_dtype=x.dtype)
    try:
        out = jax.block_until_ready(build(single_buffer_weights=True)(*args))
    except Exception:
        # pipeline_mode=pl.Buffered(1) unsupported on this jax version: defaults.
        out = build(single_buffer_weights=False)(*args)
    return out.reshape(B, T, C)


def _reference(x, params, n_head):
    """Pure-JAX reference mirroring the PyTorch forward (eval mode)."""
    B, T, C = x.shape
    hs = C // n_head
    a = jax.nn.relu(x @ params["w1"] + params["b1"])          # (B, T, C)
    v = x @ params["wv"] + params["bv"]                       # (B, T, C)
    a = a.reshape(B, T, n_head, hs)
    v = v.reshape(B, T, n_head, hs).transpose(0, 2, 1, 3)     # (B, nh, T, hs)
    att = jnp.einsum("btnh,hl->btnl", a, params["w2"]) + params["b2"]
    att = att.transpose(0, 2, 1, 3)[:, :, :, :T]              # (B, nh, T, T)
    mask = jnp.tril(jnp.ones((T, T), dtype=bool))
    att = jnp.where(mask[None, None], att, -10000000000.0)
    att = jax.nn.softmax(att, axis=-1)
    y = jnp.einsum("bntk,bnkh->bnth", att, v)                 # (B, nh, T, hs)
    y = y.transpose(0, 2, 1, 3).reshape(B, T, C)
    return y @ params["wp"] + params["bp"]


if __name__ == "__main__":
    # Small config consistent with the module: n_embd=32, n_head=4, block_size=16
    B, T, C = 2, 8, 32
    n_head = 4
    block_size = 16
    hs = C // n_head

    key = jax.random.PRNGKey(0)
    ks = jax.random.split(key, 9)
    scale = 0.1
    params = {
        "w1": scale * jax.random.normal(ks[0], (C, C), jnp.float32),
        "b1": scale * jax.random.normal(ks[1], (C,), jnp.float32),
        "wv": scale * jax.random.normal(ks[2], (C, C), jnp.float32),
        "bv": scale * jax.random.normal(ks[3], (C,), jnp.float32),
        # module init: uniform(-0.001, 0.001) for w2, zeros-ish b2
        "w2": jax.random.uniform(ks[4], (hs, block_size - 1), jnp.float32,
                                 minval=-0.001, maxval=0.001),
        "b2": 0.01 * jax.random.normal(ks[5], (block_size - 1,), jnp.float32),
        "wp": scale * jax.random.normal(ks[6], (C, C), jnp.float32),
        "bp": scale * jax.random.normal(ks[7], (C,), jnp.float32),
    }
    x = jax.random.normal(ks[8], (B, T, C), jnp.float32)

    out = synthesizer_attention(x, params, n_head)
    out = jax.block_until_ready(out)

    ref = _reference(x, params, n_head)
    assert out.shape == (B, T, C)
    assert jnp.allclose(out, ref, rtol=2e-2, atol=2e-2), "mismatch vs reference"

    print("KERNEL_OK")
</pallas_src>

<mosaic_0001>
module attributes {stable_mosaic.version = 11 : i64} {
  func.func @_synth_attn_kernel(%arg0: i32, %arg1: memref<8x32xbf16, #tpu.memory_space<vmem>>, %arg2: memref<32x32xbf16, #tpu.memory_space<vmem>>, %arg3: memref<1x32xf32, #tpu.memory_space<vmem>>, %arg4: memref<32x32xbf16, #tpu.memory_space<vmem>>, %arg5: memref<1x32xf32, #tpu.memory_space<vmem>>, %arg6: memref<32x32xbf16, #tpu.memory_space<vmem>>, %arg7: memref<8x8xf32, #tpu.memory_space<vmem>>, %arg8: memref<32x32xbf16, #tpu.memory_space<vmem>>, %arg9: memref<1x32xf32, #tpu.memory_space<vmem>>, %arg10: memref<8x32xf32, #tpu.memory_space<vmem>>) attributes {dimension_semantics = [#tpu.dimension_semantics<parallel>], iteration_bounds = array<i64: 2>, scalar_prefetch = 0 : i64, scratch_operands = 0 : i64, tpu.core_type = #tpu.core_type<tc>, window_params = [{transform_indices = @transform_0, window_bounds = array<i64: 8, 32>}, {pipeline_mode = #tpu.pipeline_mode<synchronous>, transform_indices = @transform_1, window_bounds = array<i64: 32, 32>}, {pipeline_mode = #tpu.pipeline_mode<synchronous>, transform_indices = @transform_2, window_bounds = array<i64: 1, 32>}, {pipeline_mode = #tpu.pipeline_mode<synchronous>, transform_indices = @transform_3, window_bounds = array<i64: 32, 32>}, {pipeline_mode = #tpu.pipeline_mode<synchronous>, transform_indices = @transform_4, window_bounds = array<i64: 1, 32>}, {pipeline_mode = #tpu.pipeline_mode<synchronous>, transform_indices = @transform_5, window_bounds = array<i64: 32, 32>}, {pipeline_mode = #tpu.pipeline_mode<synchronous>, transform_indices = @transform_6, window_bounds = array<i64: 8, 8>}, {pipeline_mode = #tpu.pipeline_mode<synchronous>, transform_indices = @transform_7, window_bounds = array<i64: 32, 32>}, {pipeline_mode = #tpu.pipeline_mode<synchronous>, transform_indices = @transform_8, window_bounds = array<i64: 1, 32>}, {transform_indices = @transform_9, window_bounds = array<i64: 8, 32>}]} {
    %c0 = arith.constant 0 : index
    %c0_0 = arith.constant 0 : index
    %0 = vector.load %arg1[%c0, %c0_0] : memref<8x32xbf16, #tpu.memory_space<vmem>>, vector<8x32xbf16>
    %c0_1 = arith.constant 0 : index
    %c0_2 = arith.constant 0 : index
    %1 = vector.load %arg2[%c0_1, %c0_2] : memref<32x32xbf16, #tpu.memory_space<vmem>>, vector<32x32xbf16>
    %cst = arith.constant dense<0.000000e+00> : vector<8x32xf32>
    %2 = tpu.matmul %0, %1, %cst {dimension_numbers = #tpu.dot_dimension_numbers<[1], [0], [0], [1], [0, 0, 1, 1], [], []>} : vector<8x32xbf16>, vector<32x32xbf16>, vector<8x32xf32> -> vector<8x32xf32>
    %c0_3 = arith.constant 0 : index
    %c0_4 = arith.constant 0 : index
    %3 = vector.load %arg3[%c0_3, %c0_4] : memref<1x32xf32, #tpu.memory_space<vmem>>, vector<1x32xf32>
    %4 = vector.broadcast %3 : vector<1x32xf32> to vector<8x32xf32>
    %5 = arith.addf %2, %4 : vector<8x32xf32>
    %cst_5 = arith.constant 0.000000e+00 : f32
    %6 = vector.broadcast %cst_5 : f32 to vector<8x32xf32>
    %7 = arith.maximumf %5, %6 : vector<8x32xf32>
    %c0_6 = arith.constant 0 : index
    %c0_7 = arith.constant 0 : index
    %8 = vector.load %arg4[%c0_6, %c0_7] : memref<32x32xbf16, #tpu.memory_space<vmem>>, vector<32x32xbf16>
    %cst_8 = arith.constant dense<0.000000e+00> : vector<8x32xf32>
    %9 = tpu.matmul %0, %8, %cst_8 {dimension_numbers = #tpu.dot_dimension_numbers<[1], [0], [0], [1], [0, 0, 1, 1], [], []>} : vector<8x32xbf16>, vector<32x32xbf16>, vector<8x32xf32> -> vector<8x32xf32>
    %c0_9 = arith.constant 0 : index
    %c0_10 = arith.constant 0 : index
    %10 = vector.load %arg5[%c0_9, %c0_10] : memref<1x32xf32, #tpu.memory_space<vmem>>, vector<1x32xf32>
    %11 = vector.broadcast %10 : vector<1x32xf32> to vector<8x32xf32>
    %12 = arith.addf %9, %11 : vector<8x32xf32>
    %13 = arith.truncf %12 : vector<8x32xf32> to vector<8x32xbf16>
    %14 = arith.truncf %7 : vector<8x32xf32> to vector<8x32xbf16>
    %c0_11 = arith.constant 0 : index
    %c0_12 = arith.constant 0 : index
    %15 = vector.load %arg6[%c0_11, %c0_12] : memref<32x32xbf16, #tpu.memory_space<vmem>>, vector<32x32xbf16>
    %cst_13 = arith.constant dense<0.000000e+00> : vector<8x32xf32>
    %16 = tpu.matmul %14, %15, %cst_13 {dimension_numbers = #tpu.dot_dimension_numbers<[1], [0], [0], [1], [0, 0, 1, 1], [], []>} : vector<8x32xbf16>, vector<32x32xbf16>, vector<8x32xf32> -> vector<8x32xf32>
    %c0_14 = arith.constant 0 : index
    %c0_15 = arith.constant 0 : index
    %17 = vector.load %arg7[%c0_14, %c0_15] : memref<8x8xf32, #tpu.memory_space<vmem>>, vector<8x8xf32>
    %c0_16 = arith.constant 0 : index
    %c0_17 = arith.constant 0 : index
    %18 = vector.load %arg9[%c0_16, %c0_17] : memref<1x32xf32, #tpu.memory_space<vmem>>, vector<1x32xf32>
    %cst_18 = arith.constant 0.000000e+00 : f32
    %19 = vector.broadcast %cst_18 : f32 to vector<8x32xf32>
    %20 = vector.extract_strided_slice %16 {offsets = [0, 0], sizes = [8, 8], strides = [1, 1]} : vector<8x32xf32> to vector<8x8xf32>
    %21 = arith.addf %20, %17 : vector<8x8xf32>
    %cst_19 = arith.constant dense<0xFF800000> : vector<8xf32>
    %22 = vector.multi_reduction <maximumf>, %21, %cst_19 [1] : vector<8x8xf32> to vector<8xf32>
    %23 = vector.shape_cast %22 : vector<8xf32> to vector<8x1xf32>
    %24 = vector.broadcast %23 : vector<8x1xf32> to vector<8x8xf32>
    %25 = arith.subf %21, %24 : vector<8x8xf32>
    %26 = math.exp %25 : vector<8x8xf32>
    %cst_20 = arith.constant dense<0.000000e+00> : vector<8xf32>
    %27 = vector.multi_reduction <add>, %26, %cst_20 [1] : vector<8x8xf32> to vector<8xf32>
    %28 = vector.shape_cast %27 : vector<8xf32> to vector<8x1xf32>
    %29 = tpu.reciprocal %28 {approx = true} : vector<8x1xf32> -> vector<8x1xf32>
    %30 = vector.broadcast %29 : vector<8x1xf32> to vector<8x8xf32>
    %31 = arith.mulf %26, %30 : vector<8x8xf32>
    %32 = arith.truncf %31 : vector<8x8xf32> to vector<8x8xbf16>
    %33 = vector.extract_strided_slice %13 {offsets = [0, 0], sizes = [8, 8], strides = [1, 1]} : vector<8x32xbf16> to vector<8x8xbf16>
    %cst_21 = arith.constant dense<0.000000e+00> : vector<8x8xf32>
    %34 = tpu.matmul %32, %33, %cst_21 {dimension_numbers = #tpu.dot_dimension_numbers<[1], [0], [0], [1], [0, 0, 1, 1], [], []>} : vector<8x8xbf16>, vector<8x8xbf16>, vector<8x8xf32> -> vector<8x8xf32>
    %35 = arith.truncf %34 : vector<8x8xf32> to vector<8x8xbf16>
    %c0_22 = arith.constant 0 : index
    %c0_23 = arith.constant 0 : index
    %36 = vector.load %arg8[%c0_22, %c0_23] : memref<32x32xbf16, #tpu.memory_space<vmem>>, vector<8x32xbf16>
    %cst_24 = arith.constant dense<0.000000e+00> : vector<8x32xf32>
    %37 = tpu.matmul %35, %36, %cst_24 {dimension_numbers = #tpu.dot_dimension_numbers<[1], [0], [0], [1], [0, 0, 1, 1], [], []>} : vector<8x8xbf16>, vector<8x32xbf16>, vector<8x32xf32> -> vector<8x32xf32>
    %38 = arith.addf %19, %37 : vector<8x32xf32>
    %39 = vector.extract_strided_slice %16 {offsets = [0, 8], sizes = [8, 8], strides = [1, 1]} : vector<8x32xf32> to vector<8x8xf32>
    %40 = arith.addf %39, %17 : vector<8x8xf32>
    %cst_25 = arith.constant dense<0xFF800000> : vector<8xf32>
    %41 = vector.multi_reduction <maximumf>, %40, %cst_25 [1] : vector<8x8xf32> to vector<8xf32>
    %42 = vector.shape_cast %41 : vector<8xf32> to vector<8x1xf32>
    %43 = vector.broadcast %42 : vector<8x1xf32> to vector<8x8xf32>
    %44 = arith.subf %40, %43 : vector<8x8xf32>
    %45 = math.exp %44 : vector<8x8xf32>
    %cst_26 = arith.constant dense<0.000000e+00> : vector<8xf32>
    %46 = vector.multi_reduction <add>, %45, %cst_26 [1] : vector<8x8xf32> to vector<8xf32>
    %47 = vector.shape_cast %46 : vector<8xf32> to vector<8x1xf32>
    %48 = tpu.reciprocal %47 {approx = true} : vector<8x1xf32> -> vector<8x1xf32>
    %49 = vector.broadcast %48 : vector<8x1xf32> to vector<8x8xf32>
    %50 = arith.mulf %45, %49 : vector<8x8xf32>
    %51 = arith.truncf %50 : vector<8x8xf32> to vector<8x8xbf16>
    %52 = vector.extract_strided_slice %13 {offsets = [0, 8], sizes = [8, 8], strides = [1, 1]} : vector<8x32xbf16> to vector<8x8xbf16>
    %cst_27 = arith.constant dense<0.000000e+00> : vector<8x8xf32>
    %53 = tpu.matmul %51, %52, %cst_27 {dimension_numbers = #tpu.dot_dimension_numbers<[1], [0], [0], [1], [0, 0, 1, 1], [], []>} : vector<8x8xbf16>, vector<8x8xbf16>, vector<8x8xf32> -> vector<8x8xf32>
    %54 = arith.truncf %53 : vector<8x8xf32> to vector<8x8xbf16>
    %c8 = arith.constant 8 : index
    %c0_28 = arith.constant 0 : index
    %55 = vector.load %arg8[%c8, %c0_28] : memref<32x32xbf16, #tpu.memory_space<vmem>>, vector<8x32xbf16>
    %cst_29 = arith.constant dense<0.000000e+00> : vector<8x32xf32>
    %56 = tpu.matmul %54, %55, %cst_29 {dimension_numbers = #tpu.dot_dimension_numbers<[1], [0], [0], [1], [0, 0, 1, 1], [], []>} : vector<8x8xbf16>, vector<8x32xbf16>, vector<8x32xf32> -> vector<8x32xf32>
    %57 = arith.addf %38, %56 : vector<8x32xf32>
    %58 = vector.extract_strided_slice %16 {offsets = [0, 16], sizes = [8, 8], strides = [1, 1]} : vector<8x32xf32> to vector<8x8xf32>
    %59 = arith.addf %58, %17 : vector<8x8xf32>
    %cst_30 = arith.constant dense<0xFF800000> : vector<8xf32>
    %60 = vector.multi_reduction <maximumf>, %59, %cst_30 [1] : vector<8x8xf32> to vector<8xf32>
    %61 = vector.shape_cast %60 : vector<8xf32> to vector<8x1xf32>
    %62 = vector.broadcast %61 : vector<8x1xf32> to vector<8x8xf32>
    %63 = arith.subf %59, %62 : vector<8x8xf32>
    %64 = math.exp %63 : vector<8x8xf32>
    %cst_31 = arith.constant dense<0.000000e+00> : vector<8xf32>
    %65 = vector.multi_reduction <add>, %64, %cst_31 [1] : vector<8x8xf32> to vector<8xf32>
    %66 = vector.shape_cast %65 : vector<8xf32> to vector<8x1xf32>
    %67 = tpu.reciprocal %66 {approx = true} : vector<8x1xf32> -> vector<8x1xf32>
    %68 = vector.broadcast %67 : vector<8x1xf32> to vector<8x8xf32>
    %69 = arith.mulf %64, %68 : vector<8x8xf32>
    %70 = arith.truncf %69 : vector<8x8xf32> to vector<8x8xbf16>
    %71 = vector.extract_strided_slice %13 {offsets = [0, 16], sizes = [8, 8], strides = [1, 1]} : vector<8x32xbf16> to vector<8x8xbf16>
    %cst_32 = arith.constant dense<0.000000e+00> : vector<8x8xf32>
    %72 = tpu.matmul %70, %71, %cst_32 {dimension_numbers = #tpu.dot_dimension_numbers<[1], [0], [0], [1], [0, 0, 1, 1], [], []>} : vector<8x8xbf16>, vector<8x8xbf16>, vector<8x8xf32> -> vector<8x8xf32>
    %73 = arith.truncf %72 : vector<8x8xf32> to vector<8x8xbf16>
    %c16 = arith.constant 16 : index
    %c0_33 = arith.constant 0 : index
    %74 = vector.load %arg8[%c16, %c0_33] : memref<32x32xbf16, #tpu.memory_space<vmem>>, vector<8x32xbf16>
    %cst_34 = arith.constant dense<0.000000e+00> : vector<8x32xf32>
    %75 = tpu.matmul %73, %74, %cst_34 {dimension_numbers = #tpu.dot_dimension_numbers<[1], [0], [0], [1], [0, 0, 1, 1], [], []>} : vector<8x8xbf16>, vector<8x32xbf16>, vector<8x32xf32> -> vector<8x32xf32>
    %76 = arith.addf %57, %75 : vector<8x32xf32>
    %77 = vector.extract_strided_slice %16 {offsets = [0, 24], sizes = [8, 8], strides = [1, 1]} : vector<8x32xf32> to vector<8x8xf32>
    %78 = arith.addf %77, %17 : vector<8x8xf32>
    %cst_35 = arith.constant dense<0xFF800000> : vector<8xf32>
    %79 = vector.multi_reduction <maximumf>, %78, %cst_35 [1] : vector<8x8xf32> to vector<8xf32>
    %80 = vector.shape_cast %79 : vector<8xf32> to vector<8x1xf32>
    %81 = vector.broadcast %80 : vector<8x1xf32> to vector<8x8xf32>
    %82 = arith.subf %78, %81 : vector<8x8xf32>
    %83 = math.exp %82 : vector<8x8xf32>
    %cst_36 = arith.constant dense<0.000000e+00> : vector<8xf32>
    %84 = vector.multi_reduction <add>, %83, %cst_36 [1] : vector<8x8xf32> to vector<8xf32>
    %85 = vector.shape_cast %84 : vector<8xf32> to vector<8x1xf32>
    %86 = tpu.reciprocal %85 {approx = true} : vector<8x1xf32> -> vector<8x1xf32>
    %87 = vector.broadcast %86 : vector<8x1xf32> to vector<8x8xf32>
    %88 = arith.mulf %83, %87 : vector<8x8xf32>
    %89 = arith.truncf %88 : vector<8x8xf32> to vector<8x8xbf16>
    %90 = vector.extract_strided_slice %13 {offsets = [0, 24], sizes = [8, 8], strides = [1, 1]} : vector<8x32xbf16> to vector<8x8xbf16>
    %cst_37 = arith.constant dense<0.000000e+00> : vector<8x8xf32>
    %91 = tpu.matmul %89, %90, %cst_37 {dimension_numbers = #tpu.dot_dimension_numbers<[1], [0], [0], [1], [0, 0, 1, 1], [], []>} : vector<8x8xbf16>, vector<8x8xbf16>, vector<8x8xf32> -> vector<8x8xf32>
    %92 = arith.truncf %91 : vector<8x8xf32> to vector<8x8xbf16>
    %c24 = arith.constant 24 : index
    %c0_38 = arith.constant 0 : index
    %93 = vector.load %arg8[%c24, %c0_38] : memref<32x32xbf16, #tpu.memory_space<vmem>>, vector<8x32xbf16>
    %cst_39 = arith.constant dense<0.000000e+00> : vector<8x32xf32>
    %94 = tpu.matmul %92, %93, %cst_39 {dimension_numbers = #tpu.dot_dimension_numbers<[1], [0], [0], [1], [0, 0, 1, 1], [], []>} : vector<8x8xbf16>, vector<8x32xbf16>, vector<8x32xf32> -> vector<8x32xf32>
    %95 = arith.addf %76, %94 : vector<8x32xf32>
    %96 = vector.broadcast %18 : vector<1x32xf32> to vector<8x32xf32>
    %97 = arith.addf %95, %96 : vector<8x32xf32>
    %c0_40 = arith.constant 0 : index
    %c0_41 = arith.constant 0 : index
    %98 = vector.load %arg10[%c0_40, %c0_41] : memref<8x32xf32, #tpu.memory_space<vmem>>, vector<8x32xf32>
    tpu.vector_store %arg10[%c0_40, %c0_41], %97 {strides = array<i32>} : memref<8x32xf32, #tpu.memory_space<vmem>>, vector<8x32xf32>,
    return
  }
  func.func @transform_0(%arg0: i32) -> (i32, i32) {
    %c0_i32 = arith.constant 0 : i32
    %c0_i32_0 = arith.constant 0 : i32
    return %arg0, %c0_i32 : i32, i32
  }
  func.func @transform_1(%arg0: i32) -> (i32, i32) {
    %c0_i32 = arith.constant 0 : i32
    %c0_i32_0 = arith.constant 0 : i32
    %c0_i32_1 = arith.constant 0 : i32
    return %c0_i32, %c0_i32_0 : i32, i32
  }
  func.func @transform_2(%arg0: i32) -> (i32, i32) {
    %c0_i32 = arith.constant 0 : i32
    %c0_i32_0 = arith.constant 0 : i32
    %c0_i32_1 = arith.constant 0 : i32
    return %c0_i32, %c0_i32_0 : i32, i32
  }
  func.func @transform_3(%arg0: i32) -> (i32, i32) {
    %c0_i32 = arith.constant 0 : i32
    %c0_i32_0 = arith.constant 0 : i32
    %c0_i32_1 = arith.constant 0 : i32
    return %c0_i32, %c0_i32_0 : i32, i32
  }
  func.func @transform_4(%arg0: i32) -> (i32, i32) {
    %c0_i32 = arith.constant 0 : i32
    %c0_i32_0 = arith.constant 0 : i32
    %c0_i32_1 = arith.constant 0 : i32
    return %c0_i32, %c0_i32_0 : i32, i32
  }
  func.func @transform_5(%arg0: i32) -> (i32, i32) {
    %c0_i32 = arith.constant 0 : i32
    %c0_i32_0 = arith.constant 0 : i32
    %c0_i32_1 = arith.constant 0 : i32
    return %c0_i32, %c0_i32_0 : i32, i32
  }
  func.func @transform_6(%arg0: i32) -> (i32, i32) {
    %c0_i32 = arith.constant 0 : i32
    %c0_i32_0 = arith.constant 0 : i32
    %c0_i32_1 = arith.constant 0 : i32
    return %c0_i32, %c0_i32_0 : i32, i32
  }
  func.func @transform_7(%arg0: i32) -> (i32, i32) {
    %c0_i32 = arith.constant 0 : i32
    %c0_i32_0 = arith.constant 0 : i32
    %c0_i32_1 = arith.constant 0 : i32
    return %c0_i32, %c0_i32_0 : i32, i32
  }
  func.func @transform_8(%arg0: i32) -> (i32, i32) {
    %c0_i32 = arith.constant 0 : i32
    %c0_i32_0 = arith.constant 0 : i32
    %c0_i32_1 = arith.constant 0 : i32
    return %c0_i32, %c0_i32_0 : i32, i32
  }
  func.func @transform_9(%arg0: i32) -> (i32, i32) {
    %c0_i32 = arith.constant 0 : i32
    %c0_i32_0 = arith.constant 0 : i32
    return %arg0, %c0_i32 : i32, i32
  }
}

module attributes {stable_mosaic.version = 11 : i64} {
  func.func @_synth_attn_kernel(%arg0: i32, %arg1: memref<8x32xbf16, #tpu.memory_space<vmem>>, %arg2: memref<32x32xbf16, #tpu.memory_space<vmem>>, %arg3: memref<1x32xf32, #tpu.memory_space<vmem>>, %arg4: memref<32x32xbf16, #tpu.memory_space<vmem>>, %arg5: memref<1x32xf32, #tpu.memory_space<vmem>>, %arg6: memref<32x32xbf16, #tpu.memory_space<vmem>>, %arg7: memref<8x8xf32, #tpu.memory_space<vmem>>, %arg8: memref<32x32xbf16, #tpu.memory_space<vmem>>, %arg9: memref<1x32xf32, #tpu.memory_space<vmem>>, %arg10: memref<8x32xf32, #tpu.memory_space<vmem>>) attributes {dimension_semantics = [#tpu.dimension_semantics<parallel>], iteration_bounds = array<i64: 2>, scalar_prefetch = 0 : i64, scratch_operands = 0 : i64, tpu.core_type = #tpu.core_type<tc>, window_params = [{transform_indices = @transform_0, window_bounds = array<i64: 8, 32>}, {pipeline_mode = #tpu.pipeline_mode<synchronous>, transform_indices = @transform_1, window_bounds = array<i64: 32, 32>}, {pipeline_mode = #tpu.pipeline_mode<synchronous>, transform_indices = @transform_2, window_bounds = array<i64: 1, 32>}, {pipeline_mode = #tpu.pipeline_mode<synchronous>, transform_indices = @transform_3, window_bounds = array<i64: 32, 32>}, {pipeline_mode = #tpu.pipeline_mode<synchronous>, transform_indices = @transform_4, window_bounds = array<i64: 1, 32>}, {pipeline_mode = #tpu.pipeline_mode<synchronous>, transform_indices = @transform_5, window_bounds = array<i64: 32, 32>}, {pipeline_mode = #tpu.pipeline_mode<synchronous>, transform_indices = @transform_6, window_bounds = array<i64: 8, 8>}, {pipeline_mode = #tpu.pipeline_mode<synchronous>, transform_indices = @transform_7, window_bounds = array<i64: 32, 32>}, {pipeline_mode = #tpu.pipeline_mode<synchronous>, transform_indices = @transform_8, window_bounds = array<i64: 1, 32>}, {transform_indices = @transform_9, window_bounds = array<i64: 8, 32>}]} {
    %c0 = arith.constant 0 : index
    %c0_0 = arith.constant 0 : index
    %0 = vector.load %arg1[%c0, %c0_0] : memref<8x32xbf16, #tpu.memory_space<vmem>>, vector<8x32xbf16>
    %c0_1 = arith.constant 0 : index
    %c0_2 = arith.constant 0 : index
    %1 = vector.load %arg2[%c0_1, %c0_2] : memref<32x32xbf16, #tpu.memory_space<vmem>>, vector<32x32xbf16>
    %cst = arith.constant dense<0.000000e+00> : vector<8x32xf32>
    %2 = tpu.matmul %0, %1, %cst {dimension_numbers = #tpu.dot_dimension_numbers<[1], [0], [0], [1], [0, 0, 1, 1], [], []>} : vector<8x32xbf16>, vector<32x32xbf16>, vector<8x32xf32> -> vector<8x32xf32>
    %c0_3 = arith.constant 0 : index
    %c0_4 = arith.constant 0 : index
    %3 = vector.load %arg3[%c0_3, %c0_4] : memref<1x32xf32, #tpu.memory_space<vmem>>, vector<1x32xf32>
    %4 = vector.broadcast %3 : vector<1x32xf32> to vector<8x32xf32>
    %5 = arith.addf %2, %4 : vector<8x32xf32>
    %cst_5 = arith.constant 0.000000e+00 : f32
    %6 = vector.broadcast %cst_5 : f32 to vector<8x32xf32>
    %7 = arith.maximumf %5, %6 : vector<8x32xf32>
    %c0_6 = arith.constant 0 : index
    %c0_7 = arith.constant 0 : index
    %8 = vector.load %arg4[%c0_6, %c0_7] : memref<32x32xbf16, #tpu.memory_space<vmem>>, vector<32x32xbf16>
    %cst_8 = arith.constant dense<0.000000e+00> : vector<8x32xf32>
    %9 = tpu.matmul %0, %8, %cst_8 {dimension_numbers = #tpu.dot_dimension_numbers<[1], [0], [0], [1], [0, 0, 1, 1], [], []>} : vector<8x32xbf16>, vector<32x32xbf16>, vector<8x32xf32> -> vector<8x32xf32>
    %c0_9 = arith.constant 0 : index
    %c0_10 = arith.constant 0 : index
    %10 = vector.load %arg5[%c0_9, %c0_10] : memref<1x32xf32, #tpu.memory_space<vmem>>, vector<1x32xf32>
    %11 = vector.broadcast %10 : vector<1x32xf32> to vector<8x32xf32>
    %12 = arith.addf %9, %11 : vector<8x32xf32>
    %13 = arith.truncf %12 : vector<8x32xf32> to vector<8x32xbf16>
    %14 = arith.truncf %7 : vector<8x32xf32> to vector<8x32xbf16>
    %c0_11 = arith.constant 0 : index
    %c0_12 = arith.constant 0 : index
    %15 = vector.load %arg6[%c0_11, %c0_12] : memref<32x32xbf16, #tpu.memory_space<vmem>>, vector<32x32xbf16>
    %cst_13 = arith.constant dense<0.000000e+00> : vector<8x32xf32>
    %16 = tpu.matmul %14, %15, %cst_13 {dimension_numbers = #tpu.dot_dimension_numbers<[1], [0], [0], [1], [0, 0, 1, 1], [], []>} : vector<8x32xbf16>, vector<32x32xbf16>, vector<8x32xf32> -> vector<8x32xf32>
    %c0_14 = arith.constant 0 : index
    %c0_15 = arith.constant 0 : index
    %17 = vector.load %arg7[%c0_14, %c0_15] : memref<8x8xf32, #tpu.memory_space<vmem>>, vector<8x8xf32>
    %c0_16 = arith.constant 0 : index
    %c0_17 = arith.constant 0 : index
    %18 = vector.load %arg9[%c0_16, %c0_17] : memref<1x32xf32, #tpu.memory_space<vmem>>, vector<1x32xf32>
    %cst_18 = arith.constant 0.000000e+00 : f32
    %19 = vector.broadcast %cst_18 : f32 to vector<8x32xf32>
    %20 = vector.extract_strided_slice %16 {offsets = [0, 0], sizes = [8, 8], strides = [1, 1]} : vector<8x32xf32> to vector<8x8xf32>
    %21 = arith.addf %20, %17 : vector<8x8xf32>
    %cst_19 = arith.constant dense<0xFF800000> : vector<8xf32>
    %22 = vector.multi_reduction <maximumf>, %21, %cst_19 [1] : vector<8x8xf32> to vector<8xf32>
    %23 = vector.shape_cast %22 : vector<8xf32> to vector<8x1xf32>
    %24 = vector.broadcast %23 : vector<8x1xf32> to vector<8x8xf32>
    %25 = arith.subf %21, %24 : vector<8x8xf32>
    %26 = math.exp %25 : vector<8x8xf32>
    %cst_20 = arith.constant dense<0.000000e+00> : vector<8xf32>
    %27 = vector.multi_reduction <add>, %26, %cst_20 [1] : vector<8x8xf32> to vector<8xf32>
    %28 = vector.shape_cast %27 : vector<8xf32> to vector<8x1xf32>
    %29 = tpu.reciprocal %28 {approx = true} : vector<8x1xf32> -> vector<8x1xf32>
    %30 = vector.broadcast %29 : vector<8x1xf32> to vector<8x8xf32>
    %31 = arith.mulf %26, %30 : vector<8x8xf32>
    %32 = arith.truncf %31 : vector<8x8xf32> to vector<8x8xbf16>
    %33 = vector.extract_strided_slice %13 {offsets = [0, 0], sizes = [8, 8], strides = [1, 1]} : vector<8x32xbf16> to vector<8x8xbf16>
    %cst_21 = arith.constant dense<0.000000e+00> : vector<8x8xf32>
    %34 = tpu.matmul %32, %33, %cst_21 {dimension_numbers = #tpu.dot_dimension_numbers<[1], [0], [0], [1], [0, 0, 1, 1], [], []>} : vector<8x8xbf16>, vector<8x8xbf16>, vector<8x8xf32> -> vector<8x8xf32>
    %35 = arith.truncf %34 : vector<8x8xf32> to vector<8x8xbf16>
    %c0_22 = arith.constant 0 : index
    %c0_23 = arith.constant 0 : index
    %36 = vector.load %arg8[%c0_22, %c0_23] : memref<32x32xbf16, #tpu.memory_space<vmem>>, vector<8x32xbf16>
    %cst_24 = arith.constant dense<0.000000e+00> : vector<8x32xf32>
    %37 = tpu.matmul %35, %36, %cst_24 {dimension_numbers = #tpu.dot_dimension_numbers<[1], [0], [0], [1], [0, 0, 1, 1], [], []>} : vector<8x8xbf16>, vector<8x32xbf16>, vector<8x32xf32> -> vector<8x32xf32>
    %38 = arith.addf %19, %37 : vector<8x32xf32>
    %39 = vector.extract_strided_slice %16 {offsets = [0, 8], sizes = [8, 8], strides = [1, 1]} : vector<8x32xf32> to vector<8x8xf32>
    %40 = arith.addf %39, %17 : vector<8x8xf32>
    %cst_25 = arith.constant dense<0xFF800000> : vector<8xf32>
    %41 = vector.multi_reduction <maximumf>, %40, %cst_25 [1] : vector<8x8xf32> to vector<8xf32>
    %42 = vector.shape_cast %41 : vector<8xf32> to vector<8x1xf32>
    %43 = vector.broadcast %42 : vector<8x1xf32> to vector<8x8xf32>
    %44 = arith.subf %40, %43 : vector<8x8xf32>
    %45 = math.exp %44 : vector<8x8xf32>
    %cst_26 = arith.constant dense<0.000000e+00> : vector<8xf32>
    %46 = vector.multi_reduction <add>, %45, %cst_26 [1] : vector<8x8xf32> to vector<8xf32>
    %47 = vector.shape_cast %46 : vector<8xf32> to vector<8x1xf32>
    %48 = tpu.reciprocal %47 {approx = true} : vector<8x1xf32> -> vector<8x1xf32>
    %49 = vector.broadcast %48 : vector<8x1xf32> to vector<8x8xf32>
    %50 = arith.mulf %45, %49 : vector<8x8xf32>
    %51 = arith.truncf %50 : vector<8x8xf32> to vector<8x8xbf16>
    %52 = vector.extract_strided_slice %13 {offsets = [0, 8], sizes = [8, 8], strides = [1, 1]} : vector<8x32xbf16> to vector<8x8xbf16>
    %cst_27 = arith.constant dense<0.000000e+00> : vector<8x8xf32>
    %53 = tpu.matmul %51, %52, %cst_27 {dimension_numbers = #tpu.dot_dimension_numbers<[1], [0], [0], [1], [0, 0, 1, 1], [], []>} : vector<8x8xbf16>, vector<8x8xbf16>, vector<8x8xf32> -> vector<8x8xf32>
    %54 = arith.truncf %53 : vector<8x8xf32> to vector<8x8xbf16>
    %c8 = arith.constant 8 : index
    %c0_28 = arith.constant 0 : index
    %55 = vector.load %arg8[%c8, %c0_28] : memref<32x32xbf16, #tpu.memory_space<vmem>>, vector<8x32xbf16>
    %cst_29 = arith.constant dense<0.000000e+00> : vector<8x32xf32>
    %56 = tpu.matmul %54, %55, %cst_29 {dimension_numbers = #tpu.dot_dimension_numbers<[1], [0], [0], [1], [0, 0, 1, 1], [], []>} : vector<8x8xbf16>, vector<8x32xbf16>, vector<8x32xf32> -> vector<8x32xf32>
    %57 = arith.addf %38, %56 : vector<8x32xf32>
    %58 = vector.extract_strided_slice %16 {offsets = [0, 16], sizes = [8, 8], strides = [1, 1]} : vector<8x32xf32> to vector<8x8xf32>
    %59 = arith.addf %58, %17 : vector<8x8xf32>
    %cst_30 = arith.constant dense<0xFF800000> : vector<8xf32>
    %60 = vector.multi_reduction <maximumf>, %59, %cst_30 [1] : vector<8x8xf32> to vector<8xf32>
    %61 = vector.shape_cast %60 : vector<8xf32> to vector<8x1xf32>
    %62 = vector.broadcast %61 : vector<8x1xf32> to vector<8x8xf32>
    %63 = arith.subf %59, %62 : vector<8x8xf32>
    %64 = math.exp %63 : vector<8x8xf32>
    %cst_31 = arith.constant dense<0.000000e+00> : vector<8xf32>
    %65 = vector.multi_reduction <add>, %64, %cst_31 [1] : vector<8x8xf32> to vector<8xf32>
    %66 = vector.shape_cast %65 : vector<8xf32> to vector<8x1xf32>
    %67 = tpu.reciprocal %66 {approx = true} : vector<8x1xf32> -> vector<8x1xf32>
    %68 = vector.broadcast %67 : vector<8x1xf32> to vector<8x8xf32>
    %69 = arith.mulf %64, %68 : vector<8x8xf32>
    %70 = arith.truncf %69 : vector<8x8xf32> to vector<8x8xbf16>
    %71 = vector.extract_strided_slice %13 {offsets = [0, 16], sizes = [8, 8], strides = [1, 1]} : vector<8x32xbf16> to vector<8x8xbf16>
    %cst_32 = arith.constant dense<0.000000e+00> : vector<8x8xf32>
    %72 = tpu.matmul %70, %71, %cst_32 {dimension_numbers = #tpu.dot_dimension_numbers<[1], [0], [0], [1], [0, 0, 1, 1], [], []>} : vector<8x8xbf16>, vector<8x8xbf16>, vector<8x8xf32> -> vector<8x8xf32>
    %73 = arith.truncf %72 : vector<8x8xf32> to vector<8x8xbf16>
    %c16 = arith.constant 16 : index
    %c0_33 = arith.constant 0 : index
    %74 = vector.load %arg8[%c16, %c0_33] : memref<32x32xbf16, #tpu.memory_space<vmem>>, vector<8x32xbf16>
    %cst_34 = arith.constant dense<0.000000e+00> : vector<8x32xf32>
    %75 = tpu.matmul %73, %74, %cst_34 {dimension_numbers = #tpu.dot_dimension_numbers<[1], [0], [0], [1], [0, 0, 1, 1], [], []>} : vector<8x8xbf16>, vector<8x32xbf16>, vector<8x32xf32> -> vector<8x32xf32>
    %76 = arith.addf %57, %75 : vector<8x32xf32>
    %77 = vector.extract_strided_slice %16 {offsets = [0, 24], sizes = [8, 8], strides = [1, 1]} : vector<8x32xf32> to vector<8x8xf32>
    %78 = arith.addf %77, %17 : vector<8x8xf32>
    %cst_35 = arith.constant dense<0xFF800000> : vector<8xf32>
    %79 = vector.multi_reduction <maximumf>, %78, %cst_35 [1] : vector<8x8xf32> to vector<8xf32>
    %80 = vector.shape_cast %79 : vector<8xf32> to vector<8x1xf32>
    %81 = vector.broadcast %80 : vector<8x1xf32> to vector<8x8xf32>
    %82 = arith.subf %78, %81 : vector<8x8xf32>
    %83 = math.exp %82 : vector<8x8xf32>
    %cst_36 = arith.constant dense<0.000000e+00> : vector<8xf32>
    %84 = vector.multi_reduction <add>, %83, %cst_36 [1] : vector<8x8xf32> to vector<8xf32>
    %85 = vector.shape_cast %84 : vector<8xf32> to vector<8x1xf32>
    %86 = tpu.reciprocal %85 {approx = true} : vector<8x1xf32> -> vector<8x1xf32>
    %87 = vector.broadcast %86 : vector<8x1xf32> to vector<8x8xf32>
    %88 = arith.mulf %83, %87 : vector<8x8xf32>
    %89 = arith.truncf %88 : vector<8x8xf32> to vector<8x8xbf16>
    %90 = vector.extract_strided_slice %13 {offsets = [0, 24], sizes = [8, 8], strides = [1, 1]} : vector<8x32xbf16> to vector<8x8xbf16>
    %cst_37 = arith.constant dense<0.000000e+00> : vector<8x8xf32>
    %91 = tpu.matmul %89, %90, %cst_37 {dimension_numbers = #tpu.dot_dimension_numbers<[1], [0], [0], [1], [0, 0, 1, 1], [], []>} : vector<8x8xbf16>, vector<8x8xbf16>, vector<8x8xf32> -> vector<8x8xf32>
    %92 = arith.truncf %91 : vector<8x8xf32> to vector<8x8xbf16>
    %c24 = arith.constant 24 : index
    %c0_38 = arith.constant 0 : index
    %93 = vector.load %arg8[%c24, %c0_38] : memref<32x32xbf16, #tpu.memory_space<vmem>>, vector<8x32xbf16>
    %cst_39 = arith.constant dense<0.000000e+00> : vector<8x32xf32>
    %94 = tpu.matmul %92, %93, %cst_39 {dimension_numbers = #tpu.dot_dimension_numbers<[1], [0], [0], [1], [0, 0, 1, 1], [], []>} : vector<8x8xbf16>, vector<8x32xbf16>, vector<8x32xf32> -> vector<8x32xf32>
    %95 = arith.addf %76, %94 : vector<8x32xf32>
    %96 = vector.broadcast %18 : vector<1x32xf32> to vector<8x32xf32>
    %97 = arith.addf %95, %96 : vector<8x32xf32>
    %c0_40 = arith.constant 0 : index
    %c0_41 = arith.constant 0 : index
    %98 = vector.load %arg10[%c0_40, %c0_41] : memref<8x32xf32, #tpu.memory_space<vmem>>, vector<8x32xf32>
    tpu.vector_store %arg10[%c0_40, %c0_41], %97 {strides = array<i32>} : memref<8x32xf32, #tpu.memory_space<vmem>>, vector<8x32xf32>,
    return
  }
  func.func @transform_0(%arg0: i32) -> (i32, i32) {
    %c0_i32 = arith.constant 0 : i32
    %c0_i32_0 = arith.constant 0 : i32
    return %arg0, %c0_i32 : i32, i32
  }
  func.func @transform_1(%arg0: i32) -> (i32, i32) {
    %c0_i32 = arith.constant 0 : i32
    %c0_i32_0 = arith.constant 0 : i32
    %c0_i32_1 = arith.constant 0 : i32
    return %c0_i32, %c0_i32_0 : i32, i32
  }
  func.func @transform_2(%arg0: i32) -> (i32, i32) {
    %c0_i32 = arith.constant 0 : i32
    %c0_i32_0 = arith.constant 0 : i32
    %c0_i32_1 = arith.constant 0 : i32
    return %c0_i32, %c0_i32_0 : i32, i32
  }
  func.func @transform_3(%arg0: i32) -> (i32, i32) {
    %c0_i32 = arith.constant 0 : i32
    %c0_i32_0 = arith.constant 0 : i32
    %c0_i32_1 = arith.constant 0 : i32
    return %c0_i32, %c0_i32_0 : i32, i32
  }
  func.func @transform_4(%arg0: i32) -> (i32, i32) {
    %c0_i32 = arith.constant 0 : i32
    %c0_i32_0 = arith.constant 0 : i32
    %c0_i32_1 = arith.constant 0 : i32
    return %c0_i32, %c0_i32_0 : i32, i32
  }
  func.func @transform_5(%arg0: i32) -> (i32, i32) {
    %c0_i32 = arith.constant 0 : i32
    %c0_i32_0 = arith.constant 0 : i32
    %c0_i32_1 = arith.constant 0 : i32
    return %c0_i32, %c0_i32_0 : i32, i32
  }
  func.func @transform_6(%arg0: i32) -> (i32, i32) {
    %c0_i32 = arith.constant 0 : i32
    %c0_i32_0 = arith.constant 0 : i32
    %c0_i32_1 = arith.constant 0 : i32
    return %c0_i32, %c0_i32_0 : i32, i32
  }
  func.func @transform_7(%arg0: i32) -> (i32, i32) {
    %c0_i32 = arith.constant 0 : i32
    %c0_i32_0 = arith.constant 0 : i32
    %c0_i32_1 = arith.constant 0 : i32
    return %c0_i32, %c0_i32_0 : i32, i32
  }
  func.func @transform_8(%arg0: i32) -> (i32, i32) {
    %c0_i32 = arith.constant 0 : i32
    %c0_i32_0 = arith.constant 0 : i32
    %c0_i32_1 = arith.constant 0 : i32
    return %c0_i32, %c0_i32_0 : i32, i32
  }
  func.func @transform_9(%arg0: i32) -> (i32, i32) {
    %c0_i32 = arith.constant 0 : i32
    %c0_i32_0 = arith.constant 0 : i32
    return %arg0, %c0_i32 : i32, i32
  }
}

</mosaic_0001>

<bundles_post_ra>
// kernel: tpu_custom_call.1
= control target key start
LH: loop header
LB: loop body
LE: loop exit
PB: predicated region body
PF: predicated region fallthrough
CT: control target
= control target key end

     0   :  { %s2055_s0 = inlined_call_operand.hbm [shape: bf16[16,32], index: 0, kind: input, shape index: {}]   ;;  %s2056_s1 = inlined_call_operand.hbm [shape: bf16[32,32], index: 1, kind: input, shape index: {}]   ;;  %s2057_s2 = inlined_call_operand.vmem [shape: f32[1,32], index: 2, kind: input, shape index: {}]   ;;  %s2058_s3 = inlined_call_operand.hbm [shape: bf16[32,32], index: 3, kind: input, shape index: {}]   ;;  %s2059_s4 = inlined_call_operand.vmem [shape: f32[1,32], index: 4, kind: input, shape index: {}]   ;;  %s2060_s5 = inlined_call_operand.hbm [shape: bf16[32,32], index: 5, kind: input, shape index: {}]   ;;  %s2061_s6 = inlined_call_operand.vmem [shape: f32[8,8], index: 6, kind: input, shape index: {}]   ;;  %s2062_s7 = inlined_call_operand.hbm [shape: bf16[32,32], index: 7, kind: input, shape index: {}]   ;;  %s2063_s8 = inlined_call_operand.vmem [shape: f32[1,32], index: 8, kind: input, shape index: {}]   ;;  %s2064_s9 = inlined_call_operand.hbm [shape: f32[16,32], index: 9, kind: output, shape index: {}]  }
   0x1   :  { %2069 = sst [smem:[#allocation16_spill]] %s2056_s1 }
   0x2   :  { %2070 = sst [smem:[#allocation17_spill]] %s2058_s3 }
   0x3   :  { %2071 = sst [smem:[#allocation18_spill]] %s2060_s5 }
   0x4   :  { %2072 = sst [smem:[#allocation19_spill]] %s2062_s7 }
   0x5   :  { %14 = vsyncpa [#allocation3], 0 }
   0x6   :  { %16 = vsyncpa [#allocation3 + $0x1], 0 }
   0x7   :  { %17 = vsyncpa [#allocation6], 0 }
   0x8   :  { %18 = vsyncpa [#allocation9], 0 }
   0x9   :  { %19 = vsyncpa [#allocation4], 0 }
   0xa   :  { %21 = vsyncpa [#allocation4 + $0x1], 0  ;;  %s1733_s30 = smov 0   ;;  %s1735_s10 = smov 0  }
   0xb   :  { %s1737_s11 = smov 0   ;;  %s1739_s12 = smov 0  }
   0xc LB: > { %s1667_s13 = smov [#allocation5]   ;;  %s1754_s15 = sadd.s32 4294967295, %s1665_s12   ;;  %s1665_s12 = sphi %s1739_s12, %s2096_s12   ;;  %s1661_s11 = sphi %s1737_s11, %s2095_s11   ;;  %s1657_s10 = sphi %s1735_s10, %s2094_s10   ;;  %s1653_s30 = sphi %s1733_s30, %s2093_s30  }
   0xd   : > { %s264_s14 = sshll.u32 %s1667_s13, 4  ;;  %p1206_p0 = scmp.ge.s32.totalorder %s1665_s12, 1  ;;  %s265_s14 = int_to_ptr.vmem [resolvable:$true] %s264_s14 }
   0xe   : > { %p2065_p1 = scmp.eq.s32.totalorder %s1754_s15, 0  ;;  %p252_p2 = scmp.lt.s32.totalorder %s1665_s12, 3 }
   0xf   : > { %s1668_s17 = smov [#allocation8]   ;;  %s1669_s20 = smov [#allocation7]  }
  0x10   : > { %p1759_p3 = pnand %p1206_p0, %p252_p2  ;;  %s296_s18 = sshll.u32 %s1668_s17, 4  ;;  %s1772_s18 = int_to_ptr.vmem [resolvable:$true] %s296_s18 }
  0x11   : > { %s280_s21 = sshll.u32 %s1669_s20, 4  ;;  %s1472_s22 = scalar_lea.vmem %s265_s14, 256  ;;  %s1774_s21 = int_to_ptr.vmem [resolvable:$true] %s280_s21 }
  0x12   : > { %s2073_s16 = scalar_select %p1759_p3, 1, 0 }
  0x13   : > { %p1362_p5 = pneg %p1759_p3  ;;  %p1473_p8 = scmp.ne.s32.totalorder %s265_s14, %s1472_s22 }
  0x14   : > { %p1480_p11 = scmp.lt.s32.totalorder %s265_s14, %s265_s14  ;;  %p1481_p12 = scmp.lt.s32.totalorder %s1472_s22, %s1472_s22 }
  0x15   : > { %p1768_p6 = pnand %p1362_p5, %p2065_p1 }
  0x16   : > { %p1482_p13 = por %p1481_p12, %p1480_p11 }
  0x17   : > { %p1463_p7 = pneg %p1768_p6 }
  0x19   : > { %p1475_p9 = pnand %p1473_p8, %p1463_p7 }
  0x1b   : > { %p1476_p10 = pneg %p1475_p9 }
  0x1d   : > { %p1483_p0 = pnand %p1482_p13, %p1476_p10 }
  0x1f   : > { %1486 = shalt.err (!%p1483_p0)
}
  0x20   : > { %s1670_s23 = smov 64   ;;  %s1671_s24 = smov 4  }
  0x21   : > { %s2075_s1 = sld [smem:[#allocation16_spill]]  ;;  %s1498_s27 = scalar_lea.vmem %s1772_s18, 256 }
  0x22   : > { %p1499_p2 = scmp.ne.s32.totalorder %s1772_s18, %s1498_s27  ;;  %p1506_p9 = scmp.lt.s32.totalorder %s1772_s18, %s1772_s18 }
  0x23   : > { %p1507_p10 = scmp.lt.s32.totalorder %s1498_s27, %s1498_s27 }
  0x24   : > { %p1501_p5 = pnand %p1499_p2, %p1463_p7 }
  0x25   : > { %p1508_p11 = por %p1507_p10, %p1506_p9 }
  0x26   : > { %p1502_p8 = pneg %p1501_p5 }
  0x27   : > { %1365 = dma.hbm_to_vmem [thread:$0]  (!%p1768_p6), %s2075_s1, 256, %s265_s14, [#allocation6], %s1670_s23, %s1670_s23, %s1671_s24  }
  0x28   : > { %p1509_p12 = pnand %p1508_p11, %p1502_p8 }
  0x2a   : > { %1512 = shalt.err (!%p1509_p12)
}
  0x2b   : > { %s2076_s5 = sld [smem:[#allocation18_spill]]  ;;  %s1524_s13 = scalar_lea.vmem %s1774_s21, 256 }
  0x2c   : > { %p1525_p13 = scmp.ne.s32.totalorder %s1774_s21, %s1524_s13  ;;  %p1532_p5 = scmp.lt.s32.totalorder %s1774_s21, %s1774_s21 }
  0x2d   : > { %p1533_p8 = scmp.lt.s32.totalorder %s1524_s13, %s1524_s13 }
  0x2e   : > { %p1527_p0 = pnand %p1525_p13, %p1463_p7 }
  0x2f   : > { %p1534_p9 = por %p1533_p8, %p1532_p5 }
  0x30   : > { %p1528_p2 = pneg %p1527_p0 }
  0x31   : > { %1371 = dma.hbm_to_vmem [thread:$0]  (!%p1768_p6), %s2076_s5, 256, %s1772_s18, [#allocation9], %s1670_s23, %s1670_s23, %s1671_s24  }
  0x32   : > { %p1535_p10 = pnand %p1534_p9, %p1528_p2 }
  0x34   : > { %1538 = shalt.err (!%p1535_p10)
}
  0x35   : > { %s2077_s3 = sld [smem:[#allocation17_spill]]  ;;  %s1672_s18 = smov [#allocation10]  }
  0x36   : > { %s312_s20 = sshll.u32 %s1672_s18, 4  ;;  %s313_s20 = int_to_ptr.vmem [resolvable:$true] %s312_s20 }
  0x37   : > { %s1550_s22 = scalar_lea.vmem %s313_s20, 256  ;;  %p1558_p0 = scmp.lt.s32.totalorder %s313_s20, %s313_s20 }
  0x38   : > { %p1551_p11 = scmp.ne.s32.totalorder %s313_s20, %s1550_s22  ;;  %p1559_p2 = scmp.lt.s32.totalorder %s1550_s22, %s1550_s22 }
  0x3a   : > { %p1553_p12 = pnand %p1551_p11, %p1463_p7  ;;  %p1560_p5 = por %p1559_p2, %p1558_p0 }
  0x3b   : > { %1368 = dma.hbm_to_vmem [thread:$0]  (!%p1768_p6), %s2077_s3, 256, %s1774_s21, [#allocation6], %s1670_s23, %s1670_s23, %s1671_s24  }
  0x3c   : > { %p1554_p13 = pneg %p1553_p12 }
  0x3e   : > { %p1561_p8 = pnand %p1560_p5, %p1554_p13 }
  0x40   : > { %1564 = shalt.err (!%p1561_p8)
}
  0x41   : > { %s2078_s7 = sld [smem:[#allocation19_spill]]  ;;  %s1205_s19 = sadd.s32 4294967294, %s1665_s12  }
  0x42   : > { %s1834_s26 = sadd.s32 1, %s1665_s12   ;;  %s34_s28 = sadd.s32 1, %s1661_s11 }
  0x43   : > { %s31_s27 = ssub.s32 %s1665_s12, %s1834_s26  ;;  %p41_p9 = scmp.ne.s32.totalorder %s1661_s11, %s1657_s10 }
  0x44   : > { %p32_p7 = scmp.eq.s32.totalorder %s31_s27, 0  ;;  %p42_p10 = scmp.eq.s32.totalorder %s1665_s12, 0 }
  0x45   : > { %p47_p11 = scmp.ne.s32.totalorder %s1657_s10, %s1653_s30  ;;  %p239_p13 = scmp.eq.s32.totalorder %s1754_s15, 1 }
  0x46   : > { %s1845_s29 = scalar_select %p32_p7, %s1661_s11, %s34_s28  }
  0x47   : > { %1374 = dma.hbm_to_vmem [thread:$0]  (!%p1768_p6), %s2078_s7, 256, %s313_s20, [#allocation9], %s1670_s23, %s1670_s23, %s1671_s24  }
  0x48   : > { %p1847_p12 = por %p42_p10, %p41_p9  ;;  %p1853_p6 = por %p2065_p1, %p47_p11 }
  0x49   : > { %p245_p0 = scmp.eq.s32.totalorder %s1205_s19, 1  ;;  %p1387_p2 = scmp.lt.s32.totalorder %s1665_s12, 2 }
  0x4a   : > { %s2080_s23 = scalar_select %p1853_p6, 1, 0 }
  0x4b   : > { %s329_s24 = sand.u32 1, %s1661_s11   ;;  %p1860_p5 = por %p239_p13, %p41_p9 }
  0x4c   : > { %p1864_p8 = por %p245_p0, %p47_p11  ;;  %s1212_s18 = sshll.u32 %s329_s24, 2 }
  0x4d   : > { %s2081_s14 = scalar_select %p1860_p5, 1, 0 }
  0x4e   : > { %s2082_s17 = scalar_select %p1864_p8, 1, 0 }
  0x4f   : > { %s1213_s20 = sshll.u32 %s1665_s12, 6  ;;  %s333_s19 = scalar_lea.vmem [#allocation2], %s1212_s18 }
  0x50   : > { %s1872_s25 = scalar_lea.hbm %s2055_s0, %s1213_s20  ;;  %s340_s27 = sshll.u32 %s333_s19, 4  ;;  %s341_s27 = int_to_ptr.vmem [resolvable:$true] %s340_s27 }
  0x51   : > { %p1876_p7 = pnand %p1387_p2, %p1847_p12  ;;  %s330_s1 = scalar_lea.sflag [#allocation3], %s329_s24 }
  0x52   : > { %s1565_s3 = scalar_lea.hbm %s1872_s25, 64  ;;  %s1570_s21 = scalar_lea.hbm %s2055_s0, 128 }
  0x53   : > { %p1566_p9 = scmp.ne.s32.totalorder %s1872_s25, %s1565_s3  ;;  %p1567_p10 = pneg %p1876_p7 }
  0x54   : > { %p1571_p0 = scmp.lt.s32.totalorder %s1872_s25, %s2055_s0  ;;  %p1572_p12 = scmp.lt.s32.totalorder %s1570_s21, %s1565_s3 }
  0x55   : > { %p1568_p11 = pnand %p1567_p10, %p1566_p9 }
  0x56   : > { %p1573_p2 = por %p1572_p12, %p1571_p0 }
  0x57   : > { %p1569_p13 = pneg %p1568_p11 }
  0x59   : > { %p1574_p4 = pnand %p1573_p2, %p1569_p13 }
  0x5b   : > { %1577 = shalt.err (!%p1574_p4)
}
  0x5c   : > { %s1578_s13 = scalar_lea.vmem %s341_s27, 64  ;;  %s1673_s24 = smov [#allocation2]  }
  0x5d   : > { %p1579_p1 = scmp.ne.s32.totalorder %s341_s27, %s1578_s13  ;;  %s1583_s5 = sshll.u32 %s1673_s24, 4  ;;  %s1584_s5 = int_to_ptr.vmem [resolvable:$false] %s1583_s5 }
  0x5e   : > { %s1585_s7 = scalar_lea.vmem %s1584_s5, 128  ;;  %p1586_p9 = scmp.lt.s32.totalorder %s341_s27, %s1584_s5 }
  0x5f   : > { %p1581_p8 = pnand %p1579_p1, %p1567_p10  ;;  %p1587_p11 = scmp.lt.s32.totalorder %s1585_s7, %s1578_s13 }
  0x61   : > { %p1582_p5 = pneg %p1581_p8  ;;  %p1588_p6 = por %p1587_p11, %p1586_p9 }
  0x63   : > { %p1589_p3 = pnand %p1588_p6, %p1582_p5 }
  0x65   : > { %1592 = shalt.err (!%p1589_p3)
}
  0x66   : > { %1378 = dma.hbm_to_vmem [thread:$0]  (!%p1876_p7), %s1872_s25, 64, %s341_s27, %s330_s1  }
  0x67   : > { %p2084_p13 = scmp.ne.s32.totalorder %s2073_s16, 0 }
  0x68   : > { %s1897_s3 = sand.u32 (!%p2084_p13), 1, %s1657_s10   ;;  %p2085_p1 = scmp.ne.s32.totalorder (!%p2084_p13), %s2080_s23, 0 }
  0x69   : > { %349 = sbr.rel (%p2084_p13) target bundleno = 1757 (0x6dd), region = 56  ;;  %s1215_s20 = sshll.u32 (!%p2084_p13), %s1897_s3, 2 }
  0x6a   : > { %s352_s22 = scalar_lea.sflag (!%p2084_p13), [#allocation3], %s1897_s3  ;;  %s355_s5 = scalar_lea.vmem (!%p2084_p13), [#allocation2], %s1215_s20 }
  0x6e   : > { %1636 = dma.done.wait (%p2085_p1), %s352_s22, 64  }
  0x6f   : > { %1638 = vsyncadd (%p2085_p1), %s352_s22, 4294967232  ;;  %p2086_p3 = scmp.eq.s32.totalorder %s1754_s15, 0 }
  0x71   : > { %1640 = dma.done.wait (%p2086_p3), [#allocation6], 512   ;;  %p2087_p4 = pmov %p2086_p3 }
  0x72   : > { %p2088_p6 = pmov %p2086_p3 }
  0x73   : > { %1642 = vsyncadd (%p2087_p4), [#allocation6], 4294966784 }
  0x74   : > { %1644 = dma.done.wait (%p2088_p6), [#allocation9], 512   ;;  %p2089_p5 = pmov %p2086_p3 }
  0x75   : > { %v1674_v0 = vmov 0.0   ;;  %vm1675_vm0 = vmmov 0   ;;  %v1439_v1 = vld [vmem:[#allocation5 + $0x8] sm:$0xff]   ;;  %v1440_v2 = vld [vmem:[#allocation5] sm:$0xff]   ;;  %v407_v3 = vld [vmem:[%s355_s5] sm:$0xf] }
  0x76   : > { %1646 = vsyncadd (%p2089_p5), [#allocation9], 4294966784  ;;  %1270 = vmatprep.subr.bf16.mxu0 %v1674_v0  ;;  %1274 = vmatprep.mubr.msk.bf16.mxu0 %vm1675_vm0, %v1674_v0  ;;  %vm431_vm1 = vcmask 261120   ;;  %v1441_v4 = vld [vmem:[#allocation8 + $0x8] sm:$0xff]   ;;  %v1442_v5 = vld [vmem:[#allocation8] sm:$0xff]   ;;  %s1676_s16 = smov 8  }
  0x77   : > { %1278 = vmatprep.subr.bf16.mxu1 %v1674_v0  ;;  %1282 = vmatprep.mubr.msk.bf16.mxu1 %vm1675_vm0, %v1674_v0  ;;  %v1929_v6 = vld [vmem:[%s2061_s6] sm:$0xff]  ;;  %vm670_vm2 = vcmask 130112   ;;  %s1677_s27 = smov 24   ;;  %v1444_v23 = vld [vmem:[#allocation7] sm:$0xff]   ;;  %s1678_s28 = smov 120   ;;  %vm603_vm3 = vcmask 64512  }
  0x78   : > { %1271 = vmatpush3.bf16.msra.mxu0 %v1439_v1  ;;  %666 = vrot.lane.b32.xlu0 %v1929_v6, %s1676_s16  ;;  %v1221_v7 = vld [vmem:[%s2057_s2] ss:$0 sm:$0xff]  ;;  %s1679_s21 = smov 16   ;;  %vm837_vm4 = vcmask 195712   ;;  %vm958_vm5 = vcmask 261312   ;;  %vm619_vm6 = vcmask 1043456  }
  0x79   : > { %1272 = vmatprep.subr.bf16.mxu0 %v1674_v0  ;;  %v1443_v22 = vld [vmem:[#allocation7 + $0x8] sm:$0xff]   ;;  %s1680_s13 = smov 112   ;;  %s1681_s24 = smov 104  }
  0x7a   : > { %1279 = vmatpush3.bf16.msra.mxu1 %v1443_v22  ;;  %v1225_v36 = vld [vmem:[%s2059_s4] ss:$0 sm:$0xff]  ;;  %s1220_s20 = sshll.u32 %s1897_s3, 3  ;;  %s1242_s1 = sshll.u32 %s1754_s15, 7 }
  0x7b   : > { %1280 = vmatprep.subr.bf16.mxu1 %v1674_v0  ;;  %s405_s7 = scalar_lea.vmem [#allocation11], %s1220_s20  ;;  %s1084_s15 = scalar_lea.sflag [#allocation4], %s1897_s3 }
  0x7c   : > { %1273 = vmatpush3.bf16.msra.mxu0 %v1440_v2  ;;  %s1097_s16 = sshll.u32 %s405_s7, 4  ;;  %p2090_p7 = scmp.ne.s32.totalorder %s2081_s14, 0  ;;  %s2013_s16 = int_to_ptr.vmem [resolvable:$true] %s1097_s16 }
  0x7d   : > { %1286 = vmatprep.subr.bf16.mxu0 %v1674_v0 }
  0x7e   : > { %1281 = vmatpush3.bf16.msra.mxu1 %v1444_v23 }
  0x7f   : > { %1275 = vmatmul.mubr.msk.bf16.vlgmr.msra.gmra.mxu0 %vm431_vm1, %v407_v3  ;;  %1294 = vmatprep.subr.bf16.mxu1 %v1674_v0 }
  0x80   : > { %1287 = vmatpush3.bf16.msra.mxu0 %v1441_v4  ;;  %1290 = vmatprep.mubr.msk.bf16.mxu0 %vm1675_vm0, %v1674_v0 }
  0x81   : > { %1288 = vmatprep.subr.bf16.mxu0 %v1674_v0  ;;  %1283 = vmatmul.mubr.msk.bf16.vlgmr.msra.gmra.mxu1 %vm431_vm1, %v407_v3 }
  0x82   : > { %1296 = vmatprep.mubr.msk.bf16.mxu1 %vm1675_vm0, %v1674_v0 }
  0x84   : > { %1289 = vmatpush3.bf16.msra.mxu0 %v1442_v5 }
  0x85   : > { %1300 = vmatprep.subr.bf16.mxu0 %v1674_v0 }
  0xea   : > { %v667_v15 = vpop.permute.xlu0 %666 }
 0x13f   : > { %v469_v8 = vpop.f32.mrf.mxu0 }
 0x140   : > { %v470_v9 = vadd.f32 %v1221_v7, %v469_v8 }
 0x141   : > { %v1276_v10 = vpop.f32.mrf.mxu0  ;;  %v533_v37 = vpop.f32.mrf.mxu1 }
 0x142   : > { %v475_v11 = vmax.f32 %v470_v9, 0.0  ;;  %v534_v38 = vadd.f32 %v1225_v36, %v533_v37 }
 0x143   : > { %v472_v12 = vpop.f32.mrf.mxu0  ;;  %v1284_v39 = vpop.f32.mrf.mxu1 }
 0x144   : > { %v540_v13 = vpack.c.bf16 %v475_v11, %v475_v11  ;;  %v539_v40 = vpack.c.bf16 %v534_v38, %v534_v38 }
 0x145   : > { %v1277_v14 = vpop.f32.mrf.mxu0  ;;  %v536_v41 = vpop.f32.mrf.mxu1 }
 0x146   : > { %1291 = vmatmul.mubr.msk.bf16.vlgmr.msra.gmra.mxu0 %vm431_vm1, %v540_v13  ;;  %v621_v43 = vsel %vm619_vm6, %v539_v40, 0 }
 0x147   : > { %1302 = vmatprep.mubr.msk.bf16.mxu0 %vm1675_vm0, %v1674_v0  ;;  %v1285_v42 = vpop.f32.mrf.mxu1  ;;  %1295 = vmatpush3.bf16.msra.mxu1 %v621_v43 }
 0x148   : > { %1306 = vmatprep.subr.bf16.mxu1 %v1674_v0 }
 0x206   : > { %v1938_v16 = vpop.f32.mrf.mxu0 }
 0x207   : > { %v669_v17 = vadd.f32 %v667_v15, %v1938_v16  ;;  %v602_v58 = vadd.f32 %v1929_v6, %v1938_v16 }
 0x208   : > { %v1292_v18 = vpop.f32.mrf.mxu0 }
 0x209   : > { %v671_v19 = vsel %vm670_vm2, %v669_v17, -inf  ;;  %v604_v59 = vsel %vm603_vm3, %v602_v58, -inf }
 0x20a   : > { %672 = vmax.xlane.f32.xlu0 %v671_v19  ;;  %v597_v20 = vpop.f32.mrf.mxu0 }
 0x20c   : > { %v1293_v21 = vpop.f32.mrf.mxu0 }
 0x20d   : > { %v740_v21 = vld [vmem:[#allocation10 + $0x4] sm:$0xf] }
 0x220   : > { %954 = vrot.lane.b32.xlu0 %v1929_v6, %s1677_s27  ;;  %s2011_s27 = scalar_lea.hbm %s2064_s9, %s1242_s1 }
 0x293   : > { %v673_v24 = vpop.xlane.xlu0 %672 }
 0x294   : > { %v674_v25 = vsub.f32 %v669_v17, %v673_v24  ;;  %v745_v24 = vsel %vm619_vm6, %v740_v21, 0 }
 0x296   : > { %v675_v26 = vmul.f32 1.442695, %v674_v25 }
 0x297   : > { %v955_v30 = vpop.permute.xlu0 %954 }
 0x298   : > { %1445 = vpow2.f32 %v675_v26  ;;  %v957_v33 = vadd.f32 %v955_v30, %v1938_v16 }
 0x29a   : > { %v959_v35 = vsel %vm958_vm5, %v957_v33, -inf }
 0x2a5   : > { %v1446_v27 = vpop.eup %1445 }
 0x2a6   : > { %678 = vrot.lane.b32.xlu1 %v1446_v27, %s1678_s28 }
 0x2aa   : > { %833 = vrot.lane.b32.xlu1 %v1929_v6, %s1679_s21  ;;  %s1682_s21 = smov [#allocation11]  }
 0x2ab   : > { %s1597_s18 = sshll.u32 %s1682_s21, 4  ;;  %s1598_s18 = int_to_ptr.vmem [resolvable:$false] %s1597_s18 }
 0x2ac   : > { %s1599_s19 = scalar_lea.vmem %s1598_s18, 256  ;;  %p1600_p12 = scmp.lt.s32.totalorder %s2013_s16, %s1598_s18 }
 0x318   : > { %v679_v28 = vpop.permute.xlu1 %678 }
 0x319   : > { %v681_v29 = vsel %vm603_vm3, %v679_v28, 0.0 }
 0x31a   : > { %682 = vadd.xlane.f32.xlu1 %v681_v29 }
 0x31c   : > { %v834_v31 = vpop.permute.xlu1 %833 }
 0x31d   : > { %v836_v32 = vadd.f32 %v834_v31, %v1938_v16 }
 0x31f   : > { %v838_v34 = vsel %vm837_vm4, %v836_v32, -inf }
 0x320   : > { %839 = vmax.xlane.f32.xlu1 %v838_v34  ;;  %v906_v34 = vld [vmem:[#allocation10 + $0x8] sm:$0xf] }
 0x321   : > { %v911_v37 = vsel %vm619_vm6, %v906_v34, 0 }
 0x324   : > { %960 = vmax.xlane.f32.xlu1 %v959_v35 }
 0x335   : > { %691 = vrot.lane.b32.xlu1 %v539_v40, %s1678_s28 }
 0x3a3   : > { %v683_v44 = vpop.xlane.xlu1 %682 }
 0x3a4   : > { %1447 = vrcp.f32 %v683_v44 }
 0x3a9   : > { %v840_v45 = vpop.xlane.xlu1 %839 }
 0x3aa   : > { %v841_v46 = vsub.f32 %v836_v32, %v840_v45  ;;  %v664_v32 = vld [vmem:[#allocation10] sm:$0xf]  ;;  %v1027_v45 = vld [vmem:[#allocation10 + $0xc] sm:$0xf] }
 0x3ac   : > { %v842_v47 = vmul.f32 1.442695, %v841_v46 }
 0x3ad   : > { %v961_v48 = vpop.xlane.xlu1 %960 }
 0x3ae   : > { %1449 = vpow2.f32 %v842_v47  ;;  %v962_v49 = vsub.f32 %v957_v33, %v961_v48  ;;  %v791_v33 = vsel %vm619_vm6, %v664_v32, 0  ;;  %v1032_v48 = vsel %vm619_vm6, %v1027_v45, 0 }
 0x3b0   : > { %v963_v50 = vmul.f32 1.442695, %v962_v49 }
 0x3b1   : > { %v1448_v51 = vpop.eup %1447  ;;  %v692_v52 = vpop.permute.xlu1 %691 }
 0x3b2   : > { %1451 = vpow2.f32 %v963_v50  ;;  %v685_v53 = vmul.f32 %v1448_v51, %v1446_v27  ;;  %v697_v54 = vsel %vm619_vm6, %v692_v52, 0 }
 0x3b3   : > { %1301 = vmatpush3.bf16.msra.mxu0 %v697_v54 }
 0x3b4   : > { %v686_v55 = vpack.c.bf16 %v685_v53, %v685_v53  ;;  %1312 = vmatprep.subr.bf16.mxu0 %v1674_v0 }
 0x3b6   : > { %688 = vrot.lane.b32.xlu0 %v686_v55, %s1678_s28  ;;  %s1593_s28 = scalar_lea.vmem %s2013_s16, 128 }
 0x3b7   : > { %p1594_p8 = scmp.ne.s32.totalorder %s2013_s16, %s1593_s28  ;;  %p1601_p2 = scmp.lt.s32.totalorder %s1599_s19, %s1593_s28 }
 0x3b9   : > { %p1595_p10 = pnand %p1594_p8, %p2090_p7  ;;  %p1602_p9 = por %p1601_p2, %p1600_p12 }
 0x3bb   : > { %v1450_v56 = vpop.eup %1449  ;;  %p1596_p0 = pneg %p1595_p10 }
 0x3bc   : > { %845 = vrot.lane.b32.xlu0 %v1450_v56, %s1680_s13 }
 0x3bd   : > { %p1603_p11 = pnand %p1602_p9, %p1596_p0 }
 0x3bf   : > { %v1452_v57 = vpop.eup %1451 }
 0x3c0   : > { %966 = vrot.lane.b32.xlu0 %v1452_v57, %s1681_s24 }
 0x3df   : > { %605 = vmax.xlane.f32.xlu0 %v604_v59 }
 0x428   : > { %v689_v60 = vpop.permute.xlu0 %688 }
 0x429   : > { %1303 = vmatmul.mubr.msk.bf16.vlgmr.msra.gmra.mxu0 %vm603_vm3, %v689_v60 }
 0x42a   : > { %1314 = vmatprep.mubr.msk.bf16.mxu0 %vm1675_vm0, %v1674_v0  ;;  %1313 = vmatpush3.bf16.msra.mxu0 %v791_v33 }
 0x42b   : > { %1324 = vmatprep.subr.bf16.mxu0 %v1674_v0 }
 0x42e   : > { %v846_v61 = vpop.permute.xlu0 %845 }
 0x42f   : > { %v848_v62 = vsel %vm603_vm3, %v846_v61, 0.0 }
 0x430   : > { %849 = vadd.xlane.f32.xlu1 %v848_v62 }
 0x432   : > { %v967_v63 = vpop.permute.xlu0 %966 }
 0x433   : > { %v969_v1 = vsel %vm603_vm3, %v967_v63, 0.0 }
 0x434   : > { %970 = vadd.xlane.f32.xlu0 %v969_v1 }
 0x441   : > { %857 = vrot.lane.b32.xlu1 %v539_v40, %s1680_s13 }
 0x445   : > { %978 = vrot.lane.b32.xlu1 %v539_v40, %s1681_s24 }
 0x468   : > { %v606_v2 = vpop.xlane.xlu0 %605 }
 0x469   : > { %v607_v3 = vsub.f32 %v602_v58, %v606_v2 }
 0x46b   : > { %v608_v4 = vmul.f32 1.442695, %v607_v3  ;;  %v1240_v3 = vld [vmem:[%s2063_s8] ss:$0 sm:$0xff] }
 0x46d   : > { %1453 = vpow2.f32 %v608_v4 }
 0x47a   : > { %v1454_v5 = vpop.eup %1453 }
 0x47b   : > { %v610_v6 = vsel %vm603_vm3, %v1454_v5, 0.0 }
 0x47c   : > { %611 = vadd.xlane.f32.xlu0 %v610_v6 }
 0x4b9   : > { %v850_v7 = vpop.xlane.xlu1 %849 }
 0x4ba   : > { %1455 = vrcp.f32 %v850_v7 }
 0x4bd   : > { %v971_v8 = vpop.xlane.xlu0 %970  ;;  %v858_v25 = vpop.permute.xlu1 %857 }
 0x4be   : > { %1457 = vrcp.f32 %v971_v8  ;;  %v863_v27 = vsel %vm619_vm6, %v858_v25, 0 }
 0x4c1   : > { %v979_v28 = vpop.permute.xlu1 %978 }
 0x4c2   : > { %v984_v30 = vsel %vm619_vm6, %v979_v28, 0 }
 0x4c7   : > { %v1456_v9 = vpop.eup %1455 }
 0x4c8   : > { %v852_v10 = vmul.f32 %v1456_v9, %v1450_v56 }
 0x4ca   : > { %v853_v11 = vpack.c.bf16 %v852_v10, %v852_v10 }
 0x4cb   : > { %v1458_v12 = vpop.eup %1457 }
 0x4cc   : > { %855 = vrot.lane.b32.xlu0 %v853_v11, %s1680_s13  ;;  %v973_v13 = vmul.f32 %v1458_v12, %v1452_v57 }
 0x4ce   : > { %v974_v14 = vpack.c.bf16 %v973_v13, %v973_v13 }
 0x4d0   : > { %976 = vrot.lane.b32.xlu1 %v974_v14, %s1681_s24 }
 0x4e9   : > { %v733_v15 = vpop.f32.mrf.mxu0 }
 0x4ea   : > { %v739_v26 = vpack.c.bf16 %v733_v15, %v733_v15 }
 0x4eb   : > { %v1304_v16 = vpop.f32.mrf.mxu0 }
 0x4ed   : > { %v736_v17 = vpop.f32.mrf.mxu0 }
 0x4ef   : > { %v1305_v18 = vpop.f32.mrf.mxu0 }
 0x505   : > { %v612_v19 = vpop.xlane.xlu0 %611 }
 0x506   : > { %1459 = vrcp.f32 %v612_v19 }
 0x513   : > { %v1460_v20 = vpop.eup %1459 }
 0x514   : > { %v614_v22 = vmul.f32 %v1460_v20, %v1454_v5 }
 0x516   : > { %v615_v23 = vpack.c.bf16 %v614_v22, %v614_v22 }
 0x518   : > { %1297 = vmatmul.mubr.msk.bf16.vlgmr.msra.gmra.mxu1 %vm603_vm3, %v615_v23 }
 0x519   : > { %1307 = vmatpush3.bf16.msra.mxu1 %v745_v24  ;;  %1308 = vmatprep.mubr.msk.bf16.mxu1 %vm1675_vm0, %v1674_v0 }
 0x51a   : > { %1318 = vmatprep.subr.bf16.mxu1 %v1674_v0 }
 0x520   : > { %1309 = vmatmul.mubr.msk.bf16.vlgmr.msra.gmra.mxu1 %vm603_vm3, %v739_v26 }
 0x521   : > { %1319 = vmatpush3.bf16.msra.mxu1 %v863_v27  ;;  %1320 = vmatprep.mubr.msk.bf16.mxu1 %vm1675_vm0, %v1674_v0 }
 0x522   : > { %1330 = vmatprep.subr.bf16.mxu1 %v1674_v0 }
 0x53e   : > { %v856_v29 = vpop.permute.xlu0 %855 }
 0x53f   : > { %1321 = vmatmul.mubr.msk.bf16.vlgmr.msra.gmra.mxu1 %vm603_vm3, %v856_v29 }
 0x540   : > { %1331 = vmatpush3.bf16.msra.mxu1 %v984_v30  ;;  %1332 = vmatprep.mubr.msk.bf16.mxu1 %vm1675_vm0, %v1674_v0 }
 0x542   : > { %v977_v31 = vpop.permute.xlu1 %976 }
 0x547   : > { %1333 = vmatmul.mubr.msk.bf16.vlgmr.msra.gmra.mxu1 %vm603_vm3, %v977_v31 }
 0x5d8   : > { %v657_v35 = vpop.f32.mrf.mxu1 }
 0x5d9   : > { %v663_v36 = vpack.c.bf16 %v657_v35, %v657_v35 }
 0x5da   : > { %v1298_v38 = vpop.f32.mrf.mxu1 }
 0x5db   : > { %1315 = vmatmul.mubr.msk.bf16.vlgmr.msra.gmra.mxu0 %vm603_vm3, %v663_v36 }
 0x5dc   : > { %v660_v39 = vpop.f32.mrf.mxu1  ;;  %1325 = vmatpush3.bf16.msra.mxu0 %v911_v37  ;;  %1326 = vmatprep.mubr.msk.bf16.mxu0 %vm1675_vm0, %v1674_v0 }
 0x5dd   : > { %1336 = vmatprep.subr.bf16.mxu0 %v1674_v0 }
 0x5de   : > { %v1299_v40 = vpop.f32.mrf.mxu1 }
 0x5e0   : > { %v781_v41 = vpop.f32.mrf.mxu1 }
 0x5e2   : > { %v1310_v42 = vpop.f32.mrf.mxu1 }
 0x5e4   : > { %v784_v43 = vpop.f32.mrf.mxu1 }
 0x5e6   : > { %v1311_v44 = vpop.f32.mrf.mxu1 }
 0x5ff   : > { %v899_v46 = vpop.f32.mrf.mxu1 }
 0x600   : > { %v905_v47 = vpack.c.bf16 %v899_v46, %v899_v46 }
 0x601   : > { %v1322_v49 = vpop.f32.mrf.mxu1 }
 0x602   : > { %1327 = vmatmul.mubr.msk.bf16.vlgmr.msra.gmra.mxu0 %vm603_vm3, %v905_v47 }
 0x603   : > { %1337 = vmatpush3.bf16.msra.mxu0 %v1032_v48  ;;  %v902_v50 = vpop.f32.mrf.mxu1  ;;  %1338 = vmatprep.mubr.msk.bf16.mxu0 %vm1675_vm0, %v1674_v0 }
 0x605   : > { %v1323_v51 = vpop.f32.mrf.mxu1 }
 0x607   : > { %v1020_v52 = vpop.f32.mrf.mxu1 }
 0x608   : > { %v1026_v53 = vpack.c.bf16 %v1020_v52, %v1020_v52 }
 0x609   : > { %v1334_v54 = vpop.f32.mrf.mxu1 }
 0x60a   : > { %1339 = vmatmul.mubr.msk.bf16.vlgmr.msra.gmra.mxu0 %vm603_vm3, %v1026_v53 }
 0x60b   : > { %v1023_v55 = vpop.f32.mrf.mxu1 }
 0x60d   : > { %v1335_v56 = vpop.f32.mrf.mxu1 }
 0x69b   : > { %v827_v57 = vpop.f32.mrf.mxu0 }
 0x69c   : > { %v828_v1 = vadd.f32 %v827_v57, %v781_v41 }
 0x69d   : > { %v1316_v58 = vpop.f32.mrf.mxu0 }
 0x69f   : > { %v830_v59 = vpop.f32.mrf.mxu0 }
 0x6a1   : > { %v1317_v60 = vpop.f32.mrf.mxu0 }
 0x6c2   : > { %v947_v61 = vpop.f32.mrf.mxu0 }
 0x6c3   : > { %v953_v2 = vadd.f32 %v947_v61, %v828_v1 }
 0x6c4   : > { %v1328_v62 = vpop.f32.mrf.mxu0 }
 0x6c6   : > { %v950_v63 = vpop.f32.mrf.mxu0 }
 0x6c8   : > { %v1329_v0 = vpop.f32.mrf.mxu0 }
 0x6ca   : > { %v1068_v4 = vpop.f32.mrf.mxu0 }
 0x6cb   : > { %v1074_v5 = vadd.f32 %v1068_v4, %v953_v2 }
 0x6cc   : > { %v1340_v6 = vpop.f32.mrf.mxu0 }
 0x6cd   : > { %v1081_v7 = vadd.f32 %v1240_v3, %v1074_v5 }
 0x6ce   : > { %v1071_v8 = vpop.f32.mrf.mxu0 }
 0x6cf   : > { %1082 = vst.msk [vmem:[%s405_s7] sm:$0xff] %vm431_vm1, %v1081_v7 }
 0x6d0   : > { %v1341_v9 = vpop.f32.mrf.mxu0 }
 0x6d1   : > { %1606 = shalt.err (!%p1603_p11)
}
 0x6d2   : > { %s1607_s13 = scalar_lea.hbm %s2011_s27, 128  ;;  %s1611_s20 = scalar_lea.hbm %s2064_s9, 256 }
 0x6d3   : > { %p1608_p13 = scmp.ne.s32.totalorder %s2011_s27, %s1607_s13  ;;  %p1612_p4 = scmp.lt.s32.totalorder %s2011_s27, %s2064_s9 }
 0x6d4   : > { %p1613_p6 = scmp.lt.s32.totalorder %s1611_s20, %s1607_s13 }
 0x6d5   : > { %p1609_p1 = pnand %p1608_p13, %p2090_p7 }
 0x6d6   : > { %p1614_p5 = por %p1613_p6, %p1612_p4 }
 0x6d7   : > { %p1610_p3 = pneg %p1609_p1 }
 0x6d9   : > { %p1615_p8 = pnand %p1614_p5, %p1610_p3 }
 0x6db   : > { %1618 = shalt.err (!%p1615_p8)
}
 0x6dc   : > { %1360 = dma.vmem_to_hbm [thread:$0]  (%p2090_p7), %s2013_s16, 128, %s2011_s27, %s1084_s15  }
 0x6dd PF: > { %s1109_s1 = sand.u32 1, %s1653_s30   ;;  %p2091_p10 = scmp.ne.s32.totalorder %s2082_s17, 0 }
 0x6de   : > { %p2092_p0 = scmp.ge.s32.totalorder %s1665_s12, 2  ;;  %s1110_s7 = scalar_lea.sflag [#allocation4], %s1109_s1 }
 0x6e0   : > { %p1380_p12 = pnand %p2092_p0, %p2091_p10 }
 0x6e2   : > { %p1381_p2 = pneg %p1380_p12 }
 0x6e4   : > { %1648 = dma.done.wait (%p1381_p2), %s1110_s7, 128  }
 0x6e5   : > { %1650 = vsyncadd (%p1381_p2), %s1110_s7, 4294967168  ;;  %p24_p9 = scmp.ge.s32.totalorder %s1834_s26, 4   ;;  %s2093_s30 = smov %s1657_s10 }
 0x6e6   : > { %s2094_s10 = smov %s1661_s11  ;;  %s2095_s11 = smov %s1845_s29 }
 0x6e7   : > { %s2096_s12 = smov %s1834_s26  ;;  %26 = sbr.rel (!%p24_p9) target bundleno = 12 (0xc), region = 117 }
 0x6ec   :  { %1115 = vsyncpa [#allocation3], 1 }
 0x6ed   :  { %1117 = vsyncpa [#allocation3 + $0x1], 1 }
 0x6ee   :  { %1118 = vsyncpa [#allocation6], 1 }
 0x6ef   :  { %1119 = vsyncpa [#allocation9], 1 }
 0x6f0   :  { %1120 = vsyncpa [#allocation4], 1 }
 0x6f1   :  { %1122 = vsyncpa [#allocation4 + $0x1], 1 }

// kernel: tpu_custom_call.1
= control target key start
LH: loop header
LB: loop body
LE: loop exit
PB: predicated region body
PF: predicated region fallthrough
CT: control target
= control target key end

     0   :  { %s2055_s0 = inlined_call_operand.hbm [shape: bf16[16,32], index: 0, kind: input, shape index: {}]   ;;  %s2056_s1 = inlined_call_operand.hbm [shape: bf16[32,32], index: 1, kind: input, shape index: {}]   ;;  %s2057_s2 = inlined_call_operand.vmem [shape: f32[1,32], index: 2, kind: input, shape index: {}]   ;;  %s2058_s3 = inlined_call_operand.hbm [shape: bf16[32,32], index: 3, kind: input, shape index: {}]   ;;  %s2059_s4 = inlined_call_operand.vmem [shape: f32[1,32], index: 4, kind: input, shape index: {}]   ;;  %s2060_s5 = inlined_call_operand.hbm [shape: bf16[32,32], index: 5, kind: input, shape index: {}]   ;;  %s2061_s6 = inlined_call_operand.vmem [shape: f32[8,8], index: 6, kind: input, shape index: {}]   ;;  %s2062_s7 = inlined_call_operand.hbm [shape: bf16[32,32], index: 7, kind: input, shape index: {}]   ;;  %s2063_s8 = inlined_call_operand.vmem [shape: f32[1,32], index: 8, kind: input, shape index: {}]   ;;  %s2064_s9 = inlined_call_operand.hbm [shape: f32[16,32], index: 9, kind: output, shape index: {}]  }
   0x1   :  { %2069 = sst [smem:[#allocation16_spill]] %s2056_s1 }
   0x2   :  { %2070 = sst [smem:[#allocation17_spill]] %s2058_s3 }
   0x3   :  { %2071 = sst [smem:[#allocation18_spill]] %s2060_s5 }
   0x4   :  { %2072 = sst [smem:[#allocation19_spill]] %s2062_s7 }
   0x5   :  { %14 = vsyncpa [#allocation3], 0 }
   0x6   :  { %16 = vsyncpa [#allocation3 + $0x1], 0 }
   0x7   :  { %17 = vsyncpa [#allocation6], 0 }
   0x8   :  { %18 = vsyncpa [#allocation9], 0 }
   0x9   :  { %19 = vsyncpa [#allocation4], 0 }
   0xa   :  { %21 = vsyncpa [#allocation4 + $0x1], 0  ;;  %s1733_s30 = smov 0   ;;  %s1735_s10 = smov 0  }
   0xb   :  { %s1737_s11 = smov 0   ;;  %s1739_s12 = smov 0  }
   0xc LB: > { %s1667_s13 = smov [#allocation5]   ;;  %s1754_s15 = sadd.s32 4294967295, %s1665_s12   ;;  %s1665_s12 = sphi %s1739_s12, %s2096_s12   ;;  %s1661_s11 = sphi %s1737_s11, %s2095_s11   ;;  %s1657_s10 = sphi %s1735_s10, %s2094_s10   ;;  %s1653_s30 = sphi %s1733_s30, %s2093_s30  }
   0xd   : > { %s264_s14 = sshll.u32 %s1667_s13, 4  ;;  %p1206_p0 = scmp.ge.s32.totalorder %s1665_s12, 1  ;;  %s265_s14 = int_to_ptr.vmem [resolvable:$true] %s264_s14 }
   0xe   : > { %p2065_p1 = scmp.eq.s32.totalorder %s1754_s15, 0  ;;  %p252_p2 = scmp.lt.s32.totalorder %s1665_s12, 3 }
   0xf   : > { %s1668_s17 = smov [#allocation8]   ;;  %s1669_s20 = smov [#allocation7]  }
  0x10   : > { %p1759_p3 = pnand %p1206_p0, %p252_p2  ;;  %s296_s18 = sshll.u32 %s1668_s17, 4  ;;  %s1772_s18 = int_to_ptr.vmem [resolvable:$true] %s296_s18 }
  0x11   : > { %s280_s21 = sshll.u32 %s1669_s20, 4  ;;  %s1472_s22 = scalar_lea.vmem %s265_s14, 256  ;;  %s1774_s21 = int_to_ptr.vmem [resolvable:$true] %s280_s21 }
  0x12   : > { %s2073_s16 = scalar_select %p1759_p3, 1, 0 }
  0x13   : > { %p1362_p5 = pneg %p1759_p3  ;;  %p1473_p8 = scmp.ne.s32.totalorder %s265_s14, %s1472_s22 }
  0x14   : > { %p1480_p11 = scmp.lt.s32.totalorder %s265_s14, %s265_s14  ;;  %p1481_p12 = scmp.lt.s32.totalorder %s1472_s22, %s1472_s22 }
  0x15   : > { %p1768_p6 = pnand %p1362_p5, %p2065_p1 }
  0x16   : > { %p1482_p13 = por %p1481_p12, %p1480_p11 }
  0x17   : > { %p1463_p7 = pneg %p1768_p6 }
  0x19   : > { %p1475_p9 = pnand %p1473_p8, %p1463_p7 }
  0x1b   : > { %p1476_p10 = pneg %p1475_p9 }
  0x1d   : > { %p1483_p0 = pnand %p1482_p13, %p1476_p10 }
  0x1f   : > { %1486 = shalt.err (!%p1483_p0)
}
  0x20   : > { %s1670_s23 = smov 64   ;;  %s1671_s24 = smov 4  }
  0x21   : > { %s2075_s1 = sld [smem:[#allocation16_spill]]  ;;  %s1498_s27 = scalar_lea.vmem %s1772_s18, 256 }
  0x22   : > { %p1499_p2 = scmp.ne.s32.totalorder %s1772_s18, %s1498_s27  ;;  %p1506_p9 = scmp.lt.s32.totalorder %s1772_s18, %s1772_s18 }
  0x23   : > { %p1507_p10 = scmp.lt.s32.totalorder %s1498_s27, %s1498_s27 }
  0x24   : > { %p1501_p5 = pnand %p1499_p2, %p1463_p7 }
  0x25   : > { %p1508_p11 = por %p1507_p10, %p1506_p9 }
  0x26   : > { %p1502_p8 = pneg %p1501_p5 }
  0x27   : > { %1365 = dma.hbm_to_vmem [thread:$0]  (!%p1768_p6), %s2075_s1, 256, %s265_s14, [#allocation6], %s1670_s23, %s1670_s23, %s1671_s24  }
  0x28   : > { %p1509_p12 = pnand %p1508_p11, %p1502_p8 }
  0x2a   : > { %1512 = shalt.err (!%p1509_p12)
}
  0x2b   : > { %s2076_s5 = sld [smem:[#allocation18_spill]]  ;;  %s1524_s13 = scalar_lea.vmem %s1774_s21, 256 }
  0x2c   : > { %p1525_p13 = scmp.ne.s32.totalorder %s1774_s21, %s1524_s13  ;;  %p1532_p5 = scmp.lt.s32.totalorder %s1774_s21, %s1774_s21 }
  0x2d   : > { %p1533_p8 = scmp.lt.s32.totalorder %s1524_s13, %s1524_s13 }
  0x2e   : > { %p1527_p0 = pnand %p1525_p13, %p1463_p7 }
  0x2f   : > { %p1534_p9 = por %p1533_p8, %p1532_p5 }
  0x30   : > { %p1528_p2 = pneg %p1527_p0 }
  0x31   : > { %1371 = dma.hbm_to_vmem [thread:$0]  (!%p1768_p6), %s2076_s5, 256, %s1772_s18, [#allocation9], %s1670_s23, %s1670_s23, %s1671_s24  }
  0x32   : > { %p1535_p10 = pnand %p1534_p9, %p1528_p2 }
  0x34   : > { %1538 = shalt.err (!%p1535_p10)
}
  0x35   : > { %s2077_s3 = sld [smem:[#allocation17_spill]]  ;;  %s1672_s18 = smov [#allocation10]  }
  0x36   : > { %s312_s20 = sshll.u32 %s1672_s18, 4  ;;  %s313_s20 = int_to_ptr.vmem [resolvable:$true] %s312_s20 }
  0x37   : > { %s1550_s22 = scalar_lea.vmem %s313_s20, 256  ;;  %p1558_p0 = scmp.lt.s32.totalorder %s313_s20, %s313_s20 }
  0x38   : > { %p1551_p11 = scmp.ne.s32.totalorder %s313_s20, %s1550_s22  ;;  %p1559_p2 = scmp.lt.s32.totalorder %s1550_s22, %s1550_s22 }
  0x3a   : > { %p1553_p12 = pnand %p1551_p11, %p1463_p7  ;;  %p1560_p5 = por %p1559_p2, %p1558_p0 }
  0x3b   : > { %1368 = dma.hbm_to_vmem [thread:$0]  (!%p1768_p6), %s2077_s3, 256, %s1774_s21, [#allocation6], %s1670_s23, %s1670_s23, %s1671_s24  }
  0x3c   : > { %p1554_p13 = pneg %p1553_p12 }
  0x3e   : > { %p1561_p8 = pnand %p1560_p5, %p1554_p13 }
  0x40   : > { %1564 = shalt.err (!%p1561_p8)
}
  0x41   : > { %s2078_s7 = sld [smem:[#allocation19_spill]]  ;;  %s1205_s19 = sadd.s32 4294967294, %s1665_s12  }
  0x42   : > { %s1834_s26 = sadd.s32 1, %s1665_s12   ;;  %s34_s28 = sadd.s32 1, %s1661_s11 }
  0x43   : > { %s31_s27 = ssub.s32 %s1665_s12, %s1834_s26  ;;  %p41_p9 = scmp.ne.s32.totalorder %s1661_s11, %s1657_s10 }
  0x44   : > { %p32_p7 = scmp.eq.s32.totalorder %s31_s27, 0  ;;  %p42_p10 = scmp.eq.s32.totalorder %s1665_s12, 0 }
  0x45   : > { %p47_p11 = scmp.ne.s32.totalorder %s1657_s10, %s1653_s30  ;;  %p239_p13 = scmp.eq.s32.totalorder %s1754_s15, 1 }
  0x46   : > { %s1845_s29 = scalar_select %p32_p7, %s1661_s11, %s34_s28  }
  0x47   : > { %1374 = dma.hbm_to_vmem [thread:$0]  (!%p1768_p6), %s2078_s7, 256, %s313_s20, [#allocation9], %s1670_s23, %s1670_s23, %s1671_s24  }
  0x48   : > { %p1847_p12 = por %p42_p10, %p41_p9  ;;  %p1853_p6 = por %p2065_p1, %p47_p11 }
  0x49   : > { %p245_p0 = scmp.eq.s32.totalorder %s1205_s19, 1  ;;  %p1387_p2 = scmp.lt.s32.totalorder %s1665_s12, 2 }
  0x4a   : > { %s2080_s23 = scalar_select %p1853_p6, 1, 0 }
  0x4b   : > { %s329_s24 = sand.u32 1, %s1661_s11   ;;  %p1860_p5 = por %p239_p13, %p41_p9 }
  0x4c   : > { %p1864_p8 = por %p245_p0, %p47_p11  ;;  %s1212_s18 = sshll.u32 %s329_s24, 2 }
  0x4d   : > { %s2081_s14 = scalar_select %p1860_p5, 1, 0 }
  0x4e   : > { %s2082_s17 = scalar_select %p1864_p8, 1, 0 }
  0x4f   : > { %s1213_s20 = sshll.u32 %s1665_s12, 6  ;;  %s333_s19 = scalar_lea.vmem [#allocation2], %s1212_s18 }
  0x50   : > { %s1872_s25 = scalar_lea.hbm %s2055_s0, %s1213_s20  ;;  %s340_s27 = sshll.u32 %s333_s19, 4  ;;  %s341_s27 = int_to_ptr.vmem [resolvable:$true] %s340_s27 }
  0x51   : > { %p1876_p7 = pnand %p1387_p2, %p1847_p12  ;;  %s330_s1 = scalar_lea.sflag [#allocation3], %s329_s24 }
  0x52   : > { %s1565_s3 = scalar_lea.hbm %s1872_s25, 64  ;;  %s1570_s21 = scalar_lea.hbm %s2055_s0, 128 }
  0x53   : > { %p1566_p9 = scmp.ne.s32.totalorder %s1872_s25, %s1565_s3  ;;  %p1567_p10 = pneg %p1876_p7 }
  0x54   : > { %p1571_p0 = scmp.lt.s32.totalorder %s1872_s25, %s2055_s0  ;;  %p1572_p12 = scmp.lt.s32.totalorder %s1570_s21, %s1565_s3 }
  0x55   : > { %p1568_p11 = pnand %p1567_p10, %p1566_p9 }
  0x56   : > { %p1573_p2 = por %p1572_p12, %p1571_p0 }
  0x57   : > { %p1569_p13 = pneg %p1568_p11 }
  0x59   : > { %p1574_p4 = pnand %p1573_p2, %p1569_p13 }
  0x5b   : > { %1577 = shalt.err (!%p1574_p4)
}
  0x5c   : > { %s1578_s13 = scalar_lea.vmem %s341_s27, 64  ;;  %s1673_s24 = smov [#allocation2]  }
  0x5d   : > { %p1579_p1 = scmp.ne.s32.totalorder %s341_s27, %s1578_s13  ;;  %s1583_s5 = sshll.u32 %s1673_s24, 4  ;;  %s1584_s5 = int_to_ptr.vmem [resolvable:$false] %s1583_s5 }
  0x5e   : > { %s1585_s7 = scalar_lea.vmem %s1584_s5, 128  ;;  %p1586_p9 = scmp.lt.s32.totalorder %s341_s27, %s1584_s5 }
  0x5f   : > { %p1581_p8 = pnand %p1579_p1, %p1567_p10  ;;  %p1587_p11 = scmp.lt.s32.totalorder %s1585_s7, %s1578_s13 }
  0x61   : > { %p1582_p5 = pneg %p1581_p8  ;;  %p1588_p6 = por %p1587_p11, %p1586_p9 }
  0x63   : > { %p1589_p3 = pnand %p1588_p6, %p1582_p5 }
  0x65   : > { %1592 = shalt.err (!%p1589_p3)
}
  0x66   : > { %1378 = dma.hbm_to_vmem [thread:$0]  (!%p1876_p7), %s1872_s25, 64, %s341_s27, %s330_s1  }
  0x67   : > { %p2084_p13 = scmp.ne.s32.totalorder %s2073_s16, 0 }
  0x68   : > { %s1897_s3 = sand.u32 (!%p2084_p13), 1, %s1657_s10   ;;  %p2085_p1 = scmp.ne.s32.totalorder (!%p2084_p13), %s2080_s23, 0 }
  0x69   : > { %349 = sbr.rel (%p2084_p13) target bundleno = 1757 (0x6dd), region = 56  ;;  %s1215_s20 = sshll.u32 (!%p2084_p13), %s1897_s3, 2 }
  0x6a   : > { %s352_s22 = scalar_lea.sflag (!%p2084_p13), [#allocation3], %s1897_s3  ;;  %s355_s5 = scalar_lea.vmem (!%p2084_p13), [#allocation2], %s1215_s20 }
  0x6e   : > { %1636 = dma.done.wait (%p2085_p1), %s352_s22, 64  }
  0x6f   : > { %1638 = vsyncadd (%p2085_p1), %s352_s22, 4294967232  ;;  %p2086_p3 = scmp.eq.s32.totalorder %s1754_s15, 0 }
  0x71   : > { %1640 = dma.done.wait (%p2086_p3), [#allocation6], 512   ;;  %p2087_p4 = pmov %p2086_p3 }
  0x72   : > { %p2088_p6 = pmov %p2086_p3 }
  0x73   : > { %1642 = vsyncadd (%p2087_p4), [#allocation6], 4294966784 }
  0x74   : > { %1644 = dma.done.wait (%p2088_p6), [#allocation9], 512   ;;  %p2089_p5 = pmov %p2086_p3 }
  0x75   : > { %v1674_v0 = vmov 0.0   ;;  %vm1675_vm0 = vmmov 0   ;;  %v1439_v1 = vld [vmem:[#allocation5 + $0x8] sm:$0xff]   ;;  %v1440_v2 = vld [vmem:[#allocation5] sm:$0xff]   ;;  %v407_v3 = vld [vmem:[%s355_s5] sm:$0xf] }
  0x76   : > { %1646 = vsyncadd (%p2089_p5), [#allocation9], 4294966784  ;;  %1270 = vmatprep.subr.bf16.mxu0 %v1674_v0  ;;  %1274 = vmatprep.mubr.msk.bf16.mxu0 %vm1675_vm0, %v1674_v0  ;;  %vm431_vm1 = vcmask 261120   ;;  %v1441_v4 = vld [vmem:[#allocation8 + $0x8] sm:$0xff]   ;;  %v1442_v5 = vld [vmem:[#allocation8] sm:$0xff]   ;;  %s1676_s16 = smov 8  }
  0x77   : > { %1278 = vmatprep.subr.bf16.mxu1 %v1674_v0  ;;  %1282 = vmatprep.mubr.msk.bf16.mxu1 %vm1675_vm0, %v1674_v0  ;;  %v1929_v6 = vld [vmem:[%s2061_s6] sm:$0xff]  ;;  %vm670_vm2 = vcmask 130112   ;;  %s1677_s27 = smov 24   ;;  %v1444_v23 = vld [vmem:[#allocation7] sm:$0xff]   ;;  %s1678_s28 = smov 120   ;;  %vm603_vm3 = vcmask 64512  }
  0x78   : > { %1271 = vmatpush3.bf16.msra.mxu0 %v1439_v1  ;;  %666 = vrot.lane.b32.xlu0 %v1929_v6, %s1676_s16  ;;  %v1221_v7 = vld [vmem:[%s2057_s2] ss:$0 sm:$0xff]  ;;  %s1679_s21 = smov 16   ;;  %vm837_vm4 = vcmask 195712   ;;  %vm958_vm5 = vcmask 261312   ;;  %vm619_vm6 = vcmask 1043456  }
  0x79   : > { %1272 = vmatprep.subr.bf16.mxu0 %v1674_v0  ;;  %v1443_v22 = vld [vmem:[#allocation7 + $0x8] sm:$0xff]   ;;  %s1680_s13 = smov 112   ;;  %s1681_s24 = smov 104  }
  0x7a   : > { %1279 = vmatpush3.bf16.msra.mxu1 %v1443_v22  ;;  %v1225_v36 = vld [vmem:[%s2059_s4] ss:$0 sm:$0xff]  ;;  %s1220_s20 = sshll.u32 %s1897_s3, 3  ;;  %s1242_s1 = sshll.u32 %s1754_s15, 7 }
  0x7b   : > { %1280 = vmatprep.subr.bf16.mxu1 %v1674_v0  ;;  %s405_s7 = scalar_lea.vmem [#allocation11], %s1220_s20  ;;  %s1084_s15 = scalar_lea.sflag [#allocation4], %s1897_s3 }
  0x7c   : > { %1273 = vmatpush3.bf16.msra.mxu0 %v1440_v2  ;;  %s1097_s16 = sshll.u32 %s405_s7, 4  ;;  %p2090_p7 = scmp.ne.s32.totalorder %s2081_s14, 0  ;;  %s2013_s16 = int_to_ptr.vmem [resolvable:$true] %s1097_s16 }
  0x7d   : > { %1286 = vmatprep.subr.bf16.mxu0 %v1674_v0 }
  0x7e   : > { %1281 = vmatpush3.bf16.msra.mxu1 %v1444_v23 }
  0x7f   : > { %1275 = vmatmul.mubr.msk.bf16.vlgmr.msra.gmra.mxu0 %vm431_vm1, %v407_v3  ;;  %1294 = vmatprep.subr.bf16.mxu1 %v1674_v0 }
  0x80   : > { %1287 = vmatpush3.bf16.msra.mxu0 %v1441_v4  ;;  %1290 = vmatprep.mubr.msk.bf16.mxu0 %vm1675_vm0, %v1674_v0 }
  0x81   : > { %1288 = vmatprep.subr.bf16.mxu0 %v1674_v0  ;;  %1283 = vmatmul.mubr.msk.bf16.vlgmr.msra.gmra.mxu1 %vm431_vm1, %v407_v3 }
  0x82   : > { %1296 = vmatprep.mubr.msk.bf16.mxu1 %vm1675_vm0, %v1674_v0 }
  0x84   : > { %1289 = vmatpush3.bf16.msra.mxu0 %v1442_v5 }
  0x85   : > { %1300 = vmatprep.subr.bf16.mxu0 %v1674_v0 }
  0xea   : > { %v667_v15 = vpop.permute.xlu0 %666 }
 0x13f   : > { %v469_v8 = vpop.f32.mrf.mxu0 }
 0x140   : > { %v470_v9 = vadd.f32 %v1221_v7, %v469_v8 }
 0x141   : > { %v1276_v10 = vpop.f32.mrf.mxu0  ;;  %v533_v37 = vpop.f32.mrf.mxu1 }
 0x142   : > { %v475_v11 = vmax.f32 %v470_v9, 0.0  ;;  %v534_v38 = vadd.f32 %v1225_v36, %v533_v37 }
 0x143   : > { %v472_v12 = vpop.f32.mrf.mxu0  ;;  %v1284_v39 = vpop.f32.mrf.mxu1 }
 0x144   : > { %v540_v13 = vpack.c.bf16 %v475_v11, %v475_v11  ;;  %v539_v40 = vpack.c.bf16 %v534_v38, %v534_v38 }
 0x145   : > { %v1277_v14 = vpop.f32.mrf.mxu0  ;;  %v536_v41 = vpop.f32.mrf.mxu1 }
 0x146   : > { %1291 = vmatmul.mubr.msk.bf16.vlgmr.msra.gmra.mxu0 %vm431_vm1, %v540_v13  ;;  %v621_v43 = vsel %vm619_vm6, %v539_v40, 0 }
 0x147   : > { %1302 = vmatprep.mubr.msk.bf16.mxu0 %vm1675_vm0, %v1674_v0  ;;  %v1285_v42 = vpop.f32.mrf.mxu1  ;;  %1295 = vmatpush3.bf16.msra.mxu1 %v621_v43 }
 0x148   : > { %1306 = vmatprep.subr.bf16.mxu1 %v1674_v0 }
 0x206   : > { %v1938_v16 = vpop.f32.mrf.mxu0 }
 0x207   : > { %v669_v17 = vadd.f32 %v667_v15, %v1938_v16  ;;  %v602_v58 = vadd.f32 %v1929_v6, %v1938_v16 }
 0x208   : > { %v1292_v18 = vpop.f32.mrf.mxu0 }
 0x209   : > { %v671_v19 = vsel %vm670_vm2, %v669_v17, -inf  ;;  %v604_v59 = vsel %vm603_vm3, %v602_v58, -inf }
 0x20a   : > { %672 = vmax.xlane.f32.xlu0 %v671_v19  ;;  %v597_v20 = vpop.f32.mrf.mxu0 }
 0x20c   : > { %v1293_v21 = vpop.f32.mrf.mxu0 }
 0x20d   : > { %v740_v21 = vld [vmem:[#allocation10 + $0x4] sm:$0xf] }
 0x220   : > { %954 = vrot.lane.b32.xlu0 %v1929_v6, %s1677_s27  ;;  %s2011_s27 = scalar_lea.hbm %s2064_s9, %s1242_s1 }
 0x293   : > { %v673_v24 = vpop.xlane.xlu0 %672 }
 0x294   : > { %v674_v25 = vsub.f32 %v669_v17, %v673_v24  ;;  %v745_v24 = vsel %vm619_vm6, %v740_v21, 0 }
 0x296   : > { %v675_v26 = vmul.f32 1.442695, %v674_v25 }
 0x297   : > { %v955_v30 = vpop.permute.xlu0 %954 }
 0x298   : > { %1445 = vpow2.f32 %v675_v26  ;;  %v957_v33 = vadd.f32 %v955_v30, %v1938_v16 }
 0x29a   : > { %v959_v35 = vsel %vm958_vm5, %v957_v33, -inf }
 0x2a5   : > { %v1446_v27 = vpop.eup %1445 }
 0x2a6   : > { %678 = vrot.lane.b32.xlu1 %v1446_v27, %s1678_s28 }
 0x2aa   : > { %833 = vrot.lane.b32.xlu1 %v1929_v6, %s1679_s21  ;;  %s1682_s21 = smov [#allocation11]  }
 0x2ab   : > { %s1597_s18 = sshll.u32 %s1682_s21, 4  ;;  %s1598_s18 = int_to_ptr.vmem [resolvable:$false] %s1597_s18 }
 0x2ac   : > { %s1599_s19 = scalar_lea.vmem %s1598_s18, 256  ;;  %p1600_p12 = scmp.lt.s32.totalorder %s2013_s16, %s1598_s18 }
 0x318   : > { %v679_v28 = vpop.permute.xlu1 %678 }
 0x319   : > { %v681_v29 = vsel %vm603_vm3, %v679_v28, 0.0 }
 0x31a   : > { %682 = vadd.xlane.f32.xlu1 %v681_v29 }
 0x31c   : > { %v834_v31 = vpop.permute.xlu1 %833 }
 0x31d   : > { %v836_v32 = vadd.f32 %v834_v31, %v1938_v16 }
 0x31f   : > { %v838_v34 = vsel %vm837_vm4, %v836_v32, -inf }
 0x320   : > { %839 = vmax.xlane.f32.xlu1 %v838_v34  ;;  %v906_v34 = vld [vmem:[#allocation10 + $0x8] sm:$0xf] }
 0x321   : > { %v911_v37 = vsel %vm619_vm6, %v906_v34, 0 }
 0x324   : > { %960 = vmax.xlane.f32.xlu1 %v959_v35 }
 0x335   : > { %691 = vrot.lane.b32.xlu1 %v539_v40, %s1678_s28 }
 0x3a3   : > { %v683_v44 = vpop.xlane.xlu1 %682 }
 0x3a4   : > { %1447 = vrcp.f32 %v683_v44 }
 0x3a9   : > { %v840_v45 = vpop.xlane.xlu1 %839 }
 0x3aa   : > { %v841_v46 = vsub.f32 %v836_v32, %v840_v45  ;;  %v664_v32 = vld [vmem:[#allocation10] sm:$0xf]  ;;  %v1027_v45 = vld [vmem:[#allocation10 + $0xc] sm:$0xf] }
 0x3ac   : > { %v842_v47 = vmul.f32 1.442695, %v841_v46 }
 0x3ad   : > { %v961_v48 = vpop.xlane.xlu1 %960 }
 0x3ae   : > { %1449 = vpow2.f32 %v842_v47  ;;  %v962_v49 = vsub.f32 %v957_v33, %v961_v48  ;;  %v791_v33 = vsel %vm619_vm6, %v664_v32, 0  ;;  %v1032_v48 = vsel %vm619_vm6, %v1027_v45, 0 }
 0x3b0   : > { %v963_v50 = vmul.f32 1.442695, %v962_v49 }
 0x3b1   : > { %v1448_v51 = vpop.eup %1447  ;;  %v692_v52 = vpop.permute.xlu1 %691 }
 0x3b2   : > { %1451 = vpow2.f32 %v963_v50  ;;  %v685_v53 = vmul.f32 %v1448_v51, %v1446_v27  ;;  %v697_v54 = vsel %vm619_vm6, %v692_v52, 0 }
 0x3b3   : > { %1301 = vmatpush3.bf16.msra.mxu0 %v697_v54 }
 0x3b4   : > { %v686_v55 = vpack.c.bf16 %v685_v53, %v685_v53  ;;  %1312 = vmatprep.subr.bf16.mxu0 %v1674_v0 }
 0x3b6   : > { %688 = vrot.lane.b32.xlu0 %v686_v55, %s1678_s28  ;;  %s1593_s28 = scalar_lea.vmem %s2013_s16, 128 }
 0x3b7   : > { %p1594_p8 = scmp.ne.s32.totalorder %s2013_s16, %s1593_s28  ;;  %p1601_p2 = scmp.lt.s32.totalorder %s1599_s19, %s1593_s28 }
 0x3b9   : > { %p1595_p10 = pnand %p1594_p8, %p2090_p7  ;;  %p1602_p9 = por %p1601_p2, %p1600_p12 }
 0x3bb   : > { %v1450_v56 = vpop.eup %1449  ;;  %p1596_p0 = pneg %p1595_p10 }
 0x3bc   : > { %845 = vrot.lane.b32.xlu0 %v1450_v56, %s1680_s13 }
 0x3bd   : > { %p1603_p11 = pnand %p1602_p9, %p1596_p0 }
 0x3bf   : > { %v1452_v57 = vpop.eup %1451 }
 0x3c0   : > { %966 = vrot.lane.b32.xlu0 %v1452_v57, %s1681_s24 }
 0x3df   : > { %605 = vmax.xlane.f32.xlu0 %v604_v59 }
 0x428   : > { %v689_v60 = vpop.permute.xlu0 %688 }
 0x429   : > { %1303 = vmatmul.mubr.msk.bf16.vlgmr.msra.gmra.mxu0 %vm603_vm3, %v689_v60 }
 0x42a   : > { %1314 = vmatprep.mubr.msk.bf16.mxu0 %vm1675_vm0, %v1674_v0  ;;  %1313 = vmatpush3.bf16.msra.mxu0 %v791_v33 }
 0x42b   : > { %1324 = vmatprep.subr.bf16.mxu0 %v1674_v0 }
 0x42e   : > { %v846_v61 = vpop.permute.xlu0 %845 }
 0x42f   : > { %v848_v62 = vsel %vm603_vm3, %v846_v61, 0.0 }
 0x430   : > { %849 = vadd.xlane.f32.xlu1 %v848_v62 }
 0x432   : > { %v967_v63 = vpop.permute.xlu0 %966 }
 0x433   : > { %v969_v1 = vsel %vm603_vm3, %v967_v63, 0.0 }
 0x434   : > { %970 = vadd.xlane.f32.xlu0 %v969_v1 }
 0x441   : > { %857 = vrot.lane.b32.xlu1 %v539_v40, %s1680_s13 }
 0x445   : > { %978 = vrot.lane.b32.xlu1 %v539_v40, %s1681_s24 }
 0x468   : > { %v606_v2 = vpop.xlane.xlu0 %605 }
 0x469   : > { %v607_v3 = vsub.f32 %v602_v58, %v606_v2 }
 0x46b   : > { %v608_v4 = vmul.f32 1.442695, %v607_v3  ;;  %v1240_v3 = vld [vmem:[%s2063_s8] ss:$0 sm:$0xff] }
 0x46d   : > { %1453 = vpow2.f32 %v608_v4 }
 0x47a   : > { %v1454_v5 = vpop.eup %1453 }
 0x47b   : > { %v610_v6 = vsel %vm603_vm3, %v1454_v5, 0.0 }
 0x47c   : > { %611 = vadd.xlane.f32.xlu0 %v610_v6 }
 0x4b9   : > { %v850_v7 = vpop.xlane.xlu1 %849 }
 0x4ba   : > { %1455 = vrcp.f32 %v850_v7 }
 0x4bd   : > { %v971_v8 = vpop.xlane.xlu0 %970  ;;  %v858_v25 = vpop.permute.xlu1 %857 }
 0x4be   : > { %1457 = vrcp.f32 %v971_v8  ;;  %v863_v27 = vsel %vm619_vm6, %v858_v25, 0 }
 0x4c1   : > { %v979_v28 = vpop.permute.xlu1 %978 }
 0x4c2   : > { %v984_v30 = vsel %vm619_vm6, %v979_v28, 0 }
 0x4c7   : > { %v1456_v9 = vpop.eup %1455 }
 0x4c8   : > { %v852_v10 = vmul.f32 %v1456_v9, %v1450_v56 }
 0x4ca   : > { %v853_v11 = vpack.c.bf16 %v852_v10, %v852_v10 }
 0x4cb   : > { %v1458_v12 = vpop.eup %1457 }
 0x4cc   : > { %855 = vrot.lane.b32.xlu0 %v853_v11, %s1680_s13  ;;  %v973_v13 = vmul.f32 %v1458_v12, %v1452_v57 }
 0x4ce   : > { %v974_v14 = vpack.c.bf16 %v973_v13, %v973_v13 }
 0x4d0   : > { %976 = vrot.lane.b32.xlu1 %v974_v14, %s1681_s24 }
 0x4e9   : > { %v733_v15 = vpop.f32.mrf.mxu0 }
 0x4ea   : > { %v739_v26 = vpack.c.bf16 %v733_v15, %v733_v15 }
 0x4eb   : > { %v1304_v16 = vpop.f32.mrf.mxu0 }
 0x4ed   : > { %v736_v17 = vpop.f32.mrf.mxu0 }
 0x4ef   : > { %v1305_v18 = vpop.f32.mrf.mxu0 }
 0x505   : > { %v612_v19 = vpop.xlane.xlu0 %611 }
 0x506   : > { %1459 = vrcp.f32 %v612_v19 }
 0x513   : > { %v1460_v20 = vpop.eup %1459 }
 0x514   : > { %v614_v22 = vmul.f32 %v1460_v20, %v1454_v5 }
 0x516   : > { %v615_v23 = vpack.c.bf16 %v614_v22, %v614_v22 }
 0x518   : > { %1297 = vmatmul.mubr.msk.bf16.vlgmr.msra.gmra.mxu1 %vm603_vm3, %v615_v23 }
 0x519   : > { %1307 = vmatpush3.bf16.msra.mxu1 %v745_v24  ;;  %1308 = vmatprep.mubr.msk.bf16.mxu1 %vm1675_vm0, %v1674_v0 }
 0x51a   : > { %1318 = vmatprep.subr.bf16.mxu1 %v1674_v0 }
 0x520   : > { %1309 = vmatmul.mubr.msk.bf16.vlgmr.msra.gmra.mxu1 %vm603_vm3, %v739_v26 }
 0x521   : > { %1319 = vmatpush3.bf16.msra.mxu1 %v863_v27  ;;  %1320 = vmatprep.mubr.msk.bf16.mxu1 %vm1675_vm0, %v1674_v0 }
 0x522   : > { %1330 = vmatprep.subr.bf16.mxu1 %v1674_v0 }
 0x53e   : > { %v856_v29 = vpop.permute.xlu0 %855 }
 0x53f   : > { %1321 = vmatmul.mubr.msk.bf16.vlgmr.msra.gmra.mxu1 %vm603_vm3, %v856_v29 }
 0x540   : > { %1331 = vmatpush3.bf16.msra.mxu1 %v984_v30  ;;  %1332 = vmatprep.mubr.msk.bf16.mxu1 %vm1675_vm0, %v1674_v0 }
 0x542   : > { %v977_v31 = vpop.permute.xlu1 %976 }
 0x547   : > { %1333 = vmatmul.mubr.msk.bf16.vlgmr.msra.gmra.mxu1 %vm603_vm3, %v977_v31 }
 0x5d8   : > { %v657_v35 = vpop.f32.mrf.mxu1 }
 0x5d9   : > { %v663_v36 = vpack.c.bf16 %v657_v35, %v657_v35 }
 0x5da   : > { %v1298_v38 = vpop.f32.mrf.mxu1 }
 0x5db   : > { %1315 = vmatmul.mubr.msk.bf16.vlgmr.msra.gmra.mxu0 %vm603_vm3, %v663_v36 }
 0x5dc   : > { %v660_v39 = vpop.f32.mrf.mxu1  ;;  %1325 = vmatpush3.bf16.msra.mxu0 %v911_v37  ;;  %1326 = vmatprep.mubr.msk.bf16.mxu0 %vm1675_vm0, %v1674_v0 }
 0x5dd   : > { %1336 = vmatprep.subr.bf16.mxu0 %v1674_v0 }
 0x5de   : > { %v1299_v40 = vpop.f32.mrf.mxu1 }
 0x5e0   : > { %v781_v41 = vpop.f32.mrf.mxu1 }
 0x5e2   : > { %v1310_v42 = vpop.f32.mrf.mxu1 }
 0x5e4   : > { %v784_v43 = vpop.f32.mrf.mxu1 }
 0x5e6   : > { %v1311_v44 = vpop.f32.mrf.mxu1 }
 0x5ff   : > { %v899_v46 = vpop.f32.mrf.mxu1 }
 0x600   : > { %v905_v47 = vpack.c.bf16 %v899_v46, %v899_v46 }
 0x601   : > { %v1322_v49 = vpop.f32.mrf.mxu1 }
 0x602   : > { %1327 = vmatmul.mubr.msk.bf16.vlgmr.msra.gmra.mxu0 %vm603_vm3, %v905_v47 }
 0x603   : > { %1337 = vmatpush3.bf16.msra.mxu0 %v1032_v48  ;;  %v902_v50 = vpop.f32.mrf.mxu1  ;;  %1338 = vmatprep.mubr.msk.bf16.mxu0 %vm1675_vm0, %v1674_v0 }
 0x605   : > { %v1323_v51 = vpop.f32.mrf.mxu1 }
 0x607   : > { %v1020_v52 = vpop.f32.mrf.mxu1 }
 0x608   : > { %v1026_v53 = vpack.c.bf16 %v1020_v52, %v1020_v52 }
 0x609   : > { %v1334_v54 = vpop.f32.mrf.mxu1 }
 0x60a   : > { %1339 = vmatmul.mubr.msk.bf16.vlgmr.msra.gmra.mxu0 %vm603_vm3, %v1026_v53 }
 0x60b   : > { %v1023_v55 = vpop.f32.mrf.mxu1 }
 0x60d   : > { %v1335_v56 = vpop.f32.mrf.mxu1 }
 0x69b   : > { %v827_v57 = vpop.f32.mrf.mxu0 }
 0x69c   : > { %v828_v1 = vadd.f32 %v827_v57, %v781_v41 }
 0x69d   : > { %v1316_v58 = vpop.f32.mrf.mxu0 }
 0x69f   : > { %v830_v59 = vpop.f32.mrf.mxu0 }
 0x6a1   : > { %v1317_v60 = vpop.f32.mrf.mxu0 }
 0x6c2   : > { %v947_v61 = vpop.f32.mrf.mxu0 }
 0x6c3   : > { %v953_v2 = vadd.f32 %v947_v61, %v828_v1 }
 0x6c4   : > { %v1328_v62 = vpop.f32.mrf.mxu0 }
 0x6c6   : > { %v950_v63 = vpop.f32.mrf.mxu0 }
 0x6c8   : > { %v1329_v0 = vpop.f32.mrf.mxu0 }
 0x6ca   : > { %v1068_v4 = vpop.f32.mrf.mxu0 }
 0x6cb   : > { %v1074_v5 = vadd.f32 %v1068_v4, %v953_v2 }
 0x6cc   : > { %v1340_v6 = vpop.f32.mrf.mxu0 }
 0x6cd   : > { %v1081_v7 = vadd.f32 %v1240_v3, %v1074_v5 }
 0x6ce   : > { %v1071_v8 = vpop.f32.mrf.mxu0 }
 0x6cf   : > { %1082 = vst.msk [vmem:[%s405_s7] sm:$0xff] %vm431_vm1, %v1081_v7 }
 0x6d0   : > { %v1341_v9 = vpop.f32.mrf.mxu0 }
 0x6d1   : > { %1606 = shalt.err (!%p1603_p11)
}
 0x6d2   : > { %s1607_s13 = scalar_lea.hbm %s2011_s27, 128  ;;  %s1611_s20 = scalar_lea.hbm %s2064_s9, 256 }
 0x6d3   : > { %p1608_p13 = scmp.ne.s32.totalorder %s2011_s27, %s1607_s13  ;;  %p1612_p4 = scmp.lt.s32.totalorder %s2011_s27, %s2064_s9 }
 0x6d4   : > { %p1613_p6 = scmp.lt.s32.totalorder %s1611_s20, %s1607_s13 }
 0x6d5   : > { %p1609_p1 = pnand %p1608_p13, %p2090_p7 }
 0x6d6   : > { %p1614_p5 = por %p1613_p6, %p1612_p4 }
 0x6d7   : > { %p1610_p3 = pneg %p1609_p1 }
 0x6d9   : > { %p1615_p8 = pnand %p1614_p5, %p1610_p3 }
 0x6db   : > { %1618 = shalt.err (!%p1615_p8)
}
 0x6dc   : > { %1360 = dma.vmem_to_hbm [thread:$0]  (%p2090_p7), %s2013_s16, 128, %s2011_s27, %s1084_s15  }
 0x6dd PF: > { %s1109_s1 = sand.u32 1, %s1653_s30   ;;  %p2091_p10 = scmp.ne.s32.totalorder %s2082_s17, 0 }
 0x6de   : > { %p2092_p0 = scmp.ge.s32.totalorder %s1665_s12, 2  ;;  %s1110_s7 = scalar_lea.sflag [#allocation4], %s1109_s1 }
 0x6e0   : > { %p1380_p12 = pnand %p2092_p0, %p2091_p10 }
 0x6e2   : > { %p1381_p2 = pneg %p1380_p12 }
 0x6e4   : > { %1648 = dma.done.wait (%p1381_p2), %s1110_s7, 128  }
 0x6e5   : > { %1650 = vsyncadd (%p1381_p2), %s1110_s7, 4294967168  ;;  %p24_p9 = scmp.ge.s32.totalorder %s1834_s26, 4   ;;  %s2093_s30 = smov %s1657_s10 }
 0x6e6   : > { %s2094_s10 = smov %s1661_s11  ;;  %s2095_s11 = smov %s1845_s29 }
 0x6e7   : > { %s2096_s12 = smov %s1834_s26  ;;  %26 = sbr.rel (!%p24_p9) target bundleno = 12 (0xc), region = 117 }
 0x6ec   :  { %1115 = vsyncpa [#allocation3], 1 }
 0x6ed   :  { %1117 = vsyncpa [#allocation3 + $0x1], 1 }
 0x6ee   :  { %1118 = vsyncpa [#allocation6], 1 }
 0x6ef   :  { %1119 = vsyncpa [#allocation9], 1 }
 0x6f0   :  { %1120 = vsyncpa [#allocation4], 1 }
 0x6f1   :  { %1122 = vsyncpa [#allocation4 + $0x1], 1 }

</bundles_post_ra>
